<compile_context>
chip_gen: v6e
topology: v6e:2x2x1
jax: 0.10.0
libtpu: 0.0.40
codegen_flags: <defaults>
</compile_context>

<pallas_src>
import jax
import jax.numpy as jnp
from jax.experimental import pallas as pl
from jax.experimental.pallas import tpu as pltpu

HIDDEN = 200


def _mlp_kernel(x_ref, w1_ref, b1_ref, w2_ref, b2_ref,
                w3_ref, b3_ref, w4_ref, b4_ref, o_ref):
    x = x_ref[...]                                        # (1, Tn)  batch on lanes

    # ---- Linear(1, 200) + Sigmoid ----------------------------------------
    # K=1 matmul is degenerate on the MXU; do it as a VPU broadcast FMA.
    # sigmoid(h) == 0.5*tanh(0.5*h) + 0.5 : single EUP tanh instead of exp + div.
    h = w1_ref[...] * x + b1_ref[...]                     # (200,1)*(1,Tn) -> (200,Tn)
    h = 0.5 * jnp.tanh(0.5 * h) + 0.5

    # ---- Linear(200, 200) + ELU(alpha=1) ----------------------------------
    h = jnp.dot(w2_ref[...], h.astype(w2_ref.dtype),
                preferred_element_type=jnp.float32) + b2_ref[...]
    # ELU negative branch: exp(min(h,0)) - 1  (single EUP exp; ~1e-7 abs error
    # near 0 vs expm1, well inside test tolerance; no NaN in the dead branch).
    h = jnp.where(h > 0.0, h, jnp.exp(jnp.minimum(h, 0.0)) - 1.0)

    # ---- Linear(200, 200) + ReLU ------------------------------------------
    h = jnp.dot(w3_ref[...], h.astype(w3_ref.dtype),
                preferred_element_type=jnp.float32) + b3_ref[...]
    h = jnp.maximum(h, 0.0)

    # ---- Linear(200, 1): (1,200)@(200,Tn) -> lane-dense (1,Tn) output -----
    o_ref[...] = jnp.dot(w4_ref[...], h.astype(w4_ref.dtype),
                         preferred_element_type=jnp.float32) + b4_ref[...]


def init_params(key):
    """Deterministic init mirroring nn.Linear's uniform(-1/sqrt(fan_in), +)."""
    dims = [(1, HIDDEN), (HIDDEN, HIDDEN), (HIDDEN, HIDDEN), (HIDDEN, 1)]
    params = []
    for (fan_in, fan_out) in dims:
        key, kw, kb = jax.random.split(key, 3)
        bound = 1.0 / jnp.sqrt(jnp.float32(fan_in))
        w = jax.random.uniform(kw, (fan_in, fan_out), jnp.float32, -bound, bound)
        b = jax.random.uniform(kb, (1, fan_out), jnp.float32, -bound, bound)
        params += [w, b]
    return tuple(params)


def generator_exp3_forward(z, params, *, use_bf16=True, tile_n=2048):
    """Fused MLP forward.  z: (rows, cols) -> (rows, cols)."""
    w1, b1, w2, b2, w3, b3, w4, b4 = params
    rows, cols = z.shape
    n = rows * cols

    # Batch on lanes: x is (1, N) padded up to a multiple of the lane tile.
    # Aim for >= 2 grid steps (so v7x's second TensorCore gets work via the
    # "parallel" axis) while capping the tile at tile_n to bound VMEM.
    half = -(-n // 2)                                   # ceil(n/2)
    tile = max(128, min(int(tile_n), ((half + 127) // 128) * 128))
    n_pad = ((n + tile - 1) // tile) * tile
    x = jnp.pad(z.reshape(1, n).astype(jnp.float32), ((0, 0), (0, n_pad - n)))

    mm_dtype = jnp.bfloat16 if use_bf16 else jnp.float32
    # Pre-transposed weights: features on sublanes, batch on lanes.
    w1c = w1.T.astype(jnp.float32)      # (200, 1)
    b1c = b1.T.astype(jnp.float32)      # (200, 1)
    w2t = w2.T.astype(mm_dtype)         # (200, 200)
    b2c = b2.T.astype(jnp.float32)      # (200, 1)
    w3t = w3.T.astype(mm_dtype)         # (200, 200)
    b3c = b3.T.astype(jnp.float32)      # (200, 1)
    w4r = w4.T.astype(mm_dtype)         # (1, 200)
    b4s = b4.astype(jnp.float32)        # (1, 1)
    weights = (w1c, b1c, w2t, b2c, w3t, b3c, w4r, b4s)

    grid = (n_pad // tile,)
    act_spec = pl.BlockSpec((1, tile), lambda i: (0, i))                 # pipelined over N
    resident = lambda a: pl.BlockSpec(a.shape, lambda i: (0,) * a.ndim)  # stays in VMEM

    weight_bytes = sum(int(a.size) * a.dtype.itemsize for a in weights)
    flops = 2 * n_pad * (HIDDEN + HIDDEN * HIDDEN + HIDDEN * HIDDEN + HIDDEN)
    transcendentals = 2 * n_pad * HIDDEN                 # 1 tanh + 1 exp per hidden elem
    bytes_accessed = 2 * 4 * n_pad + weight_bytes

    # VMEM budget: resident weights (x2 buffering headroom) + ~10 live (200, tile)
    # f32 temporaries + pipelined I/O blocks + margin.  Clamped to stay well under
    # v7x's 64 MiB physical VMEM while raising v5e's 16 MiB scoped default.
    act_bytes = HIDDEN * tile * 4
    vmem_est = 2 * weight_bytes + 10 * act_bytes + 4 * 2 * 2 * tile * 4 + (2 << 20)
    vmem_limit = int(min(48 << 20, max(28 << 20, vmem_est)))

    out = pl.pallas_call(
        _mlp_kernel,
        out_shape=jax.ShapeDtypeStruct((1, n_pad), jnp.float32),
        grid=grid,
        in_specs=[act_spec] + [resident(a) for a in weights],
        out_specs=act_spec,
        compiler_params=pltpu.CompilerParams(
            dimension_semantics=("parallel",),            # 2-TC split on v7x, free elsewhere
            vmem_limit_bytes=vmem_limit),
        cost_estimate=pl.CostEstimate(
            flops=int(flops),
            transcendentals=int(transcendentals),
            bytes_accessed=int(bytes_accessed)),
    )(x, *weights)

    return out[0, :n].reshape(rows, cols)


def _reference_forward(z, params):
    w1, b1, w2, b2, w3, b3, w4, b4 = params
    rows, cols = z.shape
    x = z.reshape(rows * cols, 1).astype(jnp.float32)
    h = jax.nn.sigmoid(x @ w1 + b1)
    h = jax.nn.elu(h @ w2 + b2)
    h = jax.nn.relu(h @ w3 + b3)
    return (h @ w4 + b4).reshape(rows, cols)


if __name__ == "__main__":
    key = jax.random.PRNGKey(0)
    key, kz = jax.random.split(key)

    rows, cols = 2, 16                     # z: (2, 16) -> N = 32 (single 128-lane tile)
    z = jax.random.normal(kz, (rows, cols), jnp.float32)
    params = init_params(key)
    y_ref = _reference_forward(z, params)

    # f32 MXU path: tight check against the pure-JAX reference.
    y32 = jax.block_until_ready(generator_exp3_forward(z, params, use_bf16=False))
    assert y32.shape == (rows, cols)
    assert jnp.allclose(y32, y_ref, atol=1e-4, rtol=1e-4), float(jnp.max(jnp.abs(y32 - y_ref)))

    # Default bf16-MXU fast path (f32 accumulation + f32 activation math).
    y_bf = jax.block_until_ready(generator_exp3_forward(z, params))
    assert jnp.allclose(y_bf, y_ref, atol=5e-2, rtol=5e-2), float(jnp.max(jnp.abs(y_bf - y_ref)))

    # Multi-step grid + padding path (N = 3072 -> tile 1536, 2 grid steps).
    z2 = jax.random.normal(jax.random.PRNGKey(1), (48, 64), jnp.float32)
    y2 = jax.block_until_ready(generator_exp3_forward(z2, params, use_bf16=False))
    y2_ref = _reference_forward(z2, params)
    assert jnp.allclose(y2, y2_ref, atol=1e-4, rtol=1e-4), float(jnp.max(jnp.abs(y2 - y2_ref)))

    print("KERNEL_OK")
</pallas_src>

<mosaic_0001>
module attributes {stable_mosaic.version = 11 : i64} {
  func.func @_mlp_kernel(%arg0: i32, %arg1: memref<1x128xf32, #tpu.memory_space<vmem>>, %arg2: memref<200x1xf32, #tpu.memory_space<vmem>>, %arg3: memref<200x1xf32, #tpu.memory_space<vmem>>, %arg4: memref<200x200xf32, #tpu.memory_space<vmem>>, %arg5: memref<200x1xf32, #tpu.memory_space<vmem>>, %arg6: memref<200x200xf32, #tpu.memory_space<vmem>>, %arg7: memref<200x1xf32, #tpu.memory_space<vmem>>, %arg8: memref<1x200xf32, #tpu.memory_space<vmem>>, %arg9: memref<1x1xf32, #tpu.memory_space<vmem>>, %arg10: memref<1x128xf32, #tpu.memory_space<vmem>>) attributes {dimension_semantics = [#tpu.dimension_semantics<parallel>], iteration_bounds = array<i64: 1>, scalar_prefetch = 0 : i64, scratch_operands = 0 : i64, tpu.core_type = #tpu.core_type<tc>, window_params = [{transform_indices = @transform_0, window_bounds = array<i64: 1, 128>}, {pipeline_mode = #tpu.pipeline_mode<synchronous>, transform_indices = @transform_1, window_bounds = array<i64: 200, 1>}, {pipeline_mode = #tpu.pipeline_mode<synchronous>, transform_indices = @transform_2, window_bounds = array<i64: 200, 1>}, {pipeline_mode = #tpu.pipeline_mode<synchronous>, transform_indices = @transform_3, window_bounds = array<i64: 200, 200>}, {pipeline_mode = #tpu.pipeline_mode<synchronous>, transform_indices = @transform_4, window_bounds = array<i64: 200, 1>}, {pipeline_mode = #tpu.pipeline_mode<synchronous>, transform_indices = @transform_5, window_bounds = array<i64: 200, 200>}, {pipeline_mode = #tpu.pipeline_mode<synchronous>, transform_indices = @transform_6, window_bounds = array<i64: 200, 1>}, {pipeline_mode = #tpu.pipeline_mode<synchronous>, transform_indices = @transform_7, window_bounds = array<i64: 1, 200>}, {pipeline_mode = #tpu.pipeline_mode<synchronous>, transform_indices = @transform_8, window_bounds = array<i64: 1, 1>}, {transform_indices = @transform_9, window_bounds = array<i64: 1, 128>}]} {
    %c0 = arith.constant 0 : index
    %c0_0 = arith.constant 0 : index
    %0 = vector.load %arg1[%c0, %c0_0] : memref<1x128xf32, #tpu.memory_space<vmem>>, vector<1x128xf32>
    %c0_1 = arith.constant 0 : index
    %c0_2 = arith.constant 0 : index
    %1 = vector.load %arg2[%c0_1, %c0_2] : memref<200x1xf32, #tpu.memory_space<vmem>>, vector<200x1xf32>
    %2 = vector.broadcast %1 : vector<200x1xf32> to vector<200x128xf32>
    %3 = vector.broadcast %0 : vector<1x128xf32> to vector<200x128xf32>
    %4 = arith.mulf %2, %3 : vector<200x128xf32>
    %c0_3 = arith.constant 0 : index
    %c0_4 = arith.constant 0 : index
    %5 = vector.load %arg3[%c0_3, %c0_4] : memref<200x1xf32, #tpu.memory_space<vmem>>, vector<200x1xf32>
    %6 = vector.broadcast %5 : vector<200x1xf32> to vector<200x128xf32>
    %7 = arith.addf %4, %6 : vector<200x128xf32>
    %cst = arith.constant 5.000000e-01 : f32
    %8 = vector.broadcast %cst : f32 to vector<200x128xf32>
    %9 = arith.mulf %8, %7 : vector<200x128xf32>
    %10 = math.tanh %9 : vector<200x128xf32>
    %cst_5 = arith.constant 5.000000e-01 : f32
    %11 = vector.broadcast %cst_5 : f32 to vector<200x128xf32>
    %12 = arith.mulf %11, %10 : vector<200x128xf32>
    %cst_6 = arith.constant 5.000000e-01 : f32
    %13 = vector.broadcast %cst_6 : f32 to vector<200x128xf32>
    %14 = arith.addf %12, %13 : vector<200x128xf32>
    %c0_7 = arith.constant 0 : index
    %c0_8 = arith.constant 0 : index
    %15 = vector.load %arg4[%c0_7, %c0_8] : memref<200x200xf32, #tpu.memory_space<vmem>>, vector<200x200xf32>
    %cst_9 = arith.constant dense<0.000000e+00> : vector<200x128xf32>
    %16 = tpu.matmul %15, %14, %cst_9 {dimension_numbers = #tpu.dot_dimension_numbers<[1], [0], [0], [1], [0, 0, 1, 1], [], []>} : vector<200x200xf32>, vector<200x128xf32>, vector<200x128xf32> -> vector<200x128xf32>
    %c0_10 = arith.constant 0 : index
    %c0_11 = arith.constant 0 : index
    %17 = vector.load %arg5[%c0_10, %c0_11] : memref<200x1xf32, #tpu.memory_space<vmem>>, vector<200x1xf32>
    %18 = vector.broadcast %17 : vector<200x1xf32> to vector<200x128xf32>
    %19 = arith.addf %16, %18 : vector<200x128xf32>
    %cst_12 = arith.constant 0.000000e+00 : f32
    %20 = vector.broadcast %cst_12 : f32 to vector<200x128xf32>
    %21 = arith.cmpf ogt, %19, %20 : vector<200x128xf32>
    %cst_13 = arith.constant 0.000000e+00 : f32
    %22 = vector.broadcast %cst_13 : f32 to vector<200x128xf32>
    %23 = arith.minimumf %19, %22 : vector<200x128xf32>
    %24 = math.exp %23 : vector<200x128xf32>
    %cst_14 = arith.constant 1.000000e+00 : f32
    %25 = vector.broadcast %cst_14 : f32 to vector<200x128xf32>
    %26 = arith.subf %24, %25 : vector<200x128xf32>
    %27 = arith.select %21, %19, %26 : vector<200x128xi1>, vector<200x128xf32>
    %c0_15 = arith.constant 0 : index
    %c0_16 = arith.constant 0 : index
    %28 = vector.load %arg6[%c0_15, %c0_16] : memref<200x200xf32, #tpu.memory_space<vmem>>, vector<200x200xf32>
    %cst_17 = arith.constant dense<0.000000e+00> : vector<200x128xf32>
    %29 = tpu.matmul %28, %27, %cst_17 {dimension_numbers = #tpu.dot_dimension_numbers<[1], [0], [0], [1], [0, 0, 1, 1], [], []>} : vector<200x200xf32>, vector<200x128xf32>, vector<200x128xf32> -> vector<200x128xf32>
    %c0_18 = arith.constant 0 : index
    %c0_19 = arith.constant 0 : index
    %30 = vector.load %arg7[%c0_18, %c0_19] : memref<200x1xf32, #tpu.memory_space<vmem>>, vector<200x1xf32>
    %31 = vector.broadcast %30 : vector<200x1xf32> to vector<200x128xf32>
    %32 = arith.addf %29, %31 : vector<200x128xf32>
    %cst_20 = arith.constant 0.000000e+00 : f32
    %33 = vector.broadcast %cst_20 : f32 to vector<200x128xf32>
    %34 = arith.maximumf %32, %33 : vector<200x128xf32>
    %c0_21 = arith.constant 0 : index
    %c0_22 = arith.constant 0 : index
    %35 = vector.load %arg8[%c0_21, %c0_22] : memref<1x200xf32, #tpu.memory_space<vmem>>, vector<1x200xf32>
    %cst_23 = arith.constant dense<0.000000e+00> : vector<1x128xf32>
    %36 = tpu.matmul %35, %34, %cst_23 {dimension_numbers = #tpu.dot_dimension_numbers<[1], [0], [0], [1], [0, 0, 1, 1], [], []>} : vector<1x200xf32>, vector<200x128xf32>, vector<1x128xf32> -> vector<1x128xf32>
    %c0_24 = arith.constant 0 : index
    %c0_25 = arith.constant 0 : index
    %37 = vector.load %arg9[%c0_24, %c0_25] : memref<1x1xf32, #tpu.memory_space<vmem>>, vector<1x1xf32>
    %38 = vector.broadcast %37 : vector<1x1xf32> to vector<1x128xf32>
    %39 = arith.addf %36, %38 : vector<1x128xf32>
    %c0_26 = arith.constant 0 : index
    %c0_27 = arith.constant 0 : index
    %40 = vector.load %arg10[%c0_26, %c0_27] : memref<1x128xf32, #tpu.memory_space<vmem>>, vector<1x128xf32>
    tpu.vector_store %arg10[%c0_26, %c0_27], %39 {strides = array<i32>} : memref<1x128xf32, #tpu.memory_space<vmem>>, vector<1x128xf32>,
    return
  }
  func.func @transform_0(%arg0: i32) -> (i32, i32) {
    %c0_i32 = arith.constant 0 : i32
    %c0_i32_0 = arith.constant 0 : i32
    return %c0_i32, %arg0 : i32, i32
  }
  func.func @transform_1(%arg0: i32) -> (i32, i32) {
    %c0_i32 = arith.constant 0 : i32
    %c0_i32_0 = arith.constant 0 : i32
    %c0_i32_1 = arith.constant 0 : i32
    return %c0_i32, %c0_i32_0 : i32, i32
  }
  func.func @transform_2(%arg0: i32) -> (i32, i32) {
    %c0_i32 = arith.constant 0 : i32
    %c0_i32_0 = arith.constant 0 : i32
    %c0_i32_1 = arith.constant 0 : i32
    return %c0_i32, %c0_i32_0 : i32, i32
  }
  func.func @transform_3(%arg0: i32) -> (i32, i32) {
    %c0_i32 = arith.constant 0 : i32
    %c0_i32_0 = arith.constant 0 : i32
    %c0_i32_1 = arith.constant 0 : i32
    return %c0_i32, %c0_i32_0 : i32, i32
  }
  func.func @transform_4(%arg0: i32) -> (i32, i32) {
    %c0_i32 = arith.constant 0 : i32
    %c0_i32_0 = arith.constant 0 : i32
    %c0_i32_1 = arith.constant 0 : i32
    return %c0_i32, %c0_i32_0 : i32, i32
  }
  func.func @transform_5(%arg0: i32) -> (i32, i32) {
    %c0_i32 = arith.constant 0 : i32
    %c0_i32_0 = arith.constant 0 : i32
    %c0_i32_1 = arith.constant 0 : i32
    return %c0_i32, %c0_i32_0 : i32, i32
  }
  func.func @transform_6(%arg0: i32) -> (i32, i32) {
    %c0_i32 = arith.constant 0 : i32
    %c0_i32_0 = arith.constant 0 : i32
    %c0_i32_1 = arith.constant 0 : i32
    return %c0_i32, %c0_i32_0 : i32, i32
  }
  func.func @transform_7(%arg0: i32) -> (i32, i32) {
    %c0_i32 = arith.constant 0 : i32
    %c0_i32_0 = arith.constant 0 : i32
    %c0_i32_1 = arith.constant 0 : i32
    return %c0_i32, %c0_i32_0 : i32, i32
  }
  func.func @transform_8(%arg0: i32) -> (i32, i32) {
    %c0_i32 = arith.constant 0 : i32
    %c0_i32_0 = arith.constant 0 : i32
    %c0_i32_1 = arith.constant 0 : i32
    return %c0_i32, %c0_i32_0 : i32, i32
  }
  func.func @transform_9(%arg0: i32) -> (i32, i32) {
    %c0_i32 = arith.constant 0 : i32
    %c0_i32_0 = arith.constant 0 : i32
    return %c0_i32, %arg0 : i32, i32
  }
}

</mosaic_0001>

<bundles_post_ra>
// kernel: tpu_custom_call.1
= control target key start
LH: loop header
LB: loop body
LE: loop exit
PB: predicated region body
PF: predicated region fallthrough
CT: control target
= control target key end

     0   :  { %s2930_s0 = inlined_call_operand.vmem [shape: f32[1,128], index: 0, kind: input, shape index: {}]   ;;  %s2931_s1 = inlined_call_operand.vmem [shape: f32[200,1], index: 1, kind: input, shape index: {}]   ;;  %s2932_s2 = inlined_call_operand.vmem [shape: f32[200,1], index: 2, kind: input, shape index: {}]   ;;  %s2933_s3 = inlined_call_operand.vmem [shape: f32[200,200], index: 3, kind: input, shape index: {}]   ;;  %s2934_s4 = inlined_call_operand.vmem [shape: f32[200,1], index: 4, kind: input, shape index: {}]   ;;  %s2935_s5 = inlined_call_operand.vmem [shape: f32[200,200], index: 5, kind: input, shape index: {}]   ;;  %s2936_s6 = inlined_call_operand.vmem [shape: f32[200,1], index: 6, kind: input, shape index: {}]   ;;  %s2937_s7 = inlined_call_operand.vmem [shape: f32[1,200], index: 7, kind: input, shape index: {}]   ;;  %s2938_s8 = inlined_call_operand.<no memory space> [shape: f32[1,1], index: 8, kind: input, shape index: {}]   ;;  %s2939_s9 = inlined_call_operand.hbm [shape: f32[1,128], index: 9, kind: output, shape index: {}]  }
   0x1   :  { %v14_v0 = vstv %s2938_s8 }
   0x2   :  { %15 = vst [vmem:[#allocation2] sm:$0x1] %v14_v0 }
   0x3   :  { %v232_v1 = vld [vmem:[%s2932_s2 + $0x78] sm:$0xff]  ;;  %v1911_v3 = vmov 0   ;;  %v50_v4 = vld [vmem:[%s2931_s1 + $0x70] sm:$0xff]  ;;  %v49_v5 = vld [vmem:[%s2931_s1 + $0x68] sm:$0xff]  ;;  %v1912_v14 = vmov 0.0  }
   0x4   :  { %v51_v2 = vld [vmem:[%s2931_s1 + $0x78] sm:$0xff]  ;;  %1787 = vset.pattern.permute.xlu1 %v1911_v3  ;;  %1786 = vset.pattern.permute.xlu0 %v1911_v3  ;;  %v231_v6 = vld [vmem:[%s2932_s2 + $0x70] sm:$0xff]  ;;  %v48_v7 = vld [vmem:[%s2931_s1 + $0x60] sm:$0xff] }
   0x5   :  { %319 = vperm.xlu1 %1787, %v232_v1   ;;  %138 = vperm.xlu0 %1786, %v51_v2   ;;  %v230_v8 = vld [vmem:[%s2932_s2 + $0x68] sm:$0xff]  ;;  %v47_v9 = vld [vmem:[%s2931_s1 + $0x58] sm:$0xff]  ;;  %v229_v10 = vld [vmem:[%s2932_s2 + $0x60] sm:$0xff] }
   0x6   :  { %v46_v11 = vld [vmem:[%s2931_s1 + $0x50] sm:$0xff]  ;;  %v228_v12 = vld [vmem:[%s2932_s2 + $0x58] sm:$0xff]  ;;  %v45_v13 = vld [vmem:[%s2931_s1 + $0x48] sm:$0xff]  ;;  %768 = vmatprep.subr.mxu0 %v1912_v14  ;;  %1383 = vmatprep.subr.mxu1 %v1912_v14 }
   0x7   :  { %v227_v15 = vld [vmem:[%s2932_s2 + $0x50] sm:$0xff]  ;;  %v44_v16 = vld [vmem:[%s2931_s1 + $0x40] sm:$0xff] }
   0x9   :  { %133 = vperm.xlu0 %1786, %v50_v4   ;;  %128 = vperm.xlu1 %1787, %v49_v5  }
   0xd   :  { %314 = vperm.xlu0 %1786, %v231_v6   ;;  %123 = vperm.xlu1 %1787, %v48_v7  }
  0x11   :  { %309 = vperm.xlu0 %1786, %v230_v8   ;;  %118 = vperm.xlu1 %1787, %v47_v9  }
  0x15   :  { %304 = vperm.xlu0 %1786, %v229_v10   ;;  %113 = vperm.xlu1 %1787, %v46_v11  }
  0x19   :  { %299 = vperm.xlu0 %1786, %v228_v12   ;;  %108 = vperm.xlu1 %1787, %v45_v13  }
  0x1a   :  { %16 = vsyncpa [#allocation4], 0  ;;  %v226_v17 = vld [vmem:[%s2932_s2 + $0x48] sm:$0xff]  ;;  %v43_v18 = vld [vmem:[%s2931_s1 + $0x38] sm:$0xff]  ;;  %vm692_vm0 = vcmask 588800   ;;  %s1913_s29 = smov [#allocation3]  }
  0x1b   :  { %v225_v19 = vld [vmem:[%s2932_s2 + $0x40] sm:$0xff]  ;;  %v42_v20 = vld [vmem:[%s2931_s1 + $0x30] sm:$0xff]  ;;  %v224_v21 = vld [vmem:[%s2932_s2 + $0x38] sm:$0xff] }
  0x1c   :  { %v41_v22 = vld [vmem:[%s2931_s1 + $0x28] sm:$0xff]  ;;  %v223_v23 = vld [vmem:[%s2932_s2 + $0x30] sm:$0xff]  ;;  %v40_v24 = vld [vmem:[%s2931_s1 + $0x20] sm:$0xff] }
  0x1d   :  { %294 = vperm.xlu0 %1786, %v227_v15   ;;  %103 = vperm.xlu1 %1787, %v44_v16   ;;  %v222_v25 = vld [vmem:[%s2932_s2 + $0x28] sm:$0xff]  ;;  %v39_v26 = vld [vmem:[%s2931_s1 + $0x18] sm:$0xff]  ;;  %v221_v27 = vld [vmem:[%s2932_s2 + $0x20] sm:$0xff] }
  0x1e   :  { %v38_v28 = vld [vmem:[%s2931_s1 + $0x10] sm:$0xff]  ;;  %v220_v29 = vld [vmem:[%s2932_s2 + $0x18] sm:$0xff]  ;;  %v37_v30 = vld [vmem:[%s2931_s1 + $0x8] sm:$0xff] }
  0x1f   :  { %v219_v31 = vld [vmem:[%s2932_s2 + $0x10] sm:$0xff]  ;;  %v36_v32 = vld [vmem:[%s2931_s1] sm:$0xff]  ;;  %v218_v33 = vld [vmem:[%s2932_s2 + $0x8] sm:$0xff] }
  0x20   :  { %v60_v34 = vld [vmem:[%s2931_s1 + $0xc0] sm:$0xff]  ;;  %v59_v36 = vld [vmem:[%s2931_s1 + $0xb8] sm:$0xff]  ;;  %v58_v38 = vld [vmem:[%s2931_s1 + $0xb0] sm:$0xff] }
  0x21   :  { %289 = vperm.xlu0 %1786, %v226_v17   ;;  %98 = vperm.xlu1 %1787, %v43_v18   ;;  %v217_v35 = vld [vmem:[%s2932_s2] sm:$0xff]  ;;  %v240_v39 = vld [vmem:[%s2932_s2 + $0xb8] sm:$0xff]  ;;  %v57_v40 = vld [vmem:[%s2931_s1 + $0xa8] sm:$0xff] }
  0x22   :  { %v241_v37 = vld [vmem:[%s2932_s2 + $0xc0] sm:$0xff]  ;;  %v239_v41 = vld [vmem:[%s2932_s2 + $0xb0] sm:$0xff]  ;;  %v238_v43 = vld [vmem:[%s2932_s2 + $0xa8] sm:$0xff] }
  0x23   :  { %v56_v42 = vld [vmem:[%s2931_s1 + $0xa0] sm:$0xff]  ;;  %v55_v44 = vld [vmem:[%s2931_s1 + $0x98] sm:$0xff]  ;;  %v54_v46 = vld [vmem:[%s2931_s1 + $0x90] sm:$0xff] }
  0x24   :  { %v237_v45 = vld [vmem:[%s2932_s2 + $0xa0] sm:$0xff]  ;;  %v236_v47 = vld [vmem:[%s2932_s2 + $0x98] sm:$0xff]  ;;  %v53_v48 = vld [vmem:[%s2931_s1 + $0x88] sm:$0xff] }
  0x25   :  { %284 = vperm.xlu0 %1786, %v225_v19   ;;  %93 = vperm.xlu1 %1787, %v42_v20   ;;  %v235_v49 = vld [vmem:[%s2932_s2 + $0x90] sm:$0xff]  ;;  %v52_v50 = vld [vmem:[%s2931_s1 + $0x80] sm:$0xff]  ;;  %v234_v51 = vld [vmem:[%s2932_s2 + $0x88] sm:$0xff] }
  0x26   :  { %v233_v52 = vld [vmem:[%s2932_s2 + $0x80] sm:$0xff]  ;;  %v557_v53 = vld [vmem:[%s2934_s4 + $0x78] sm:$0xff]  ;;  %v556_v54 = vld [vmem:[%s2934_s4 + $0x70] sm:$0xff] }
  0x27   :  { %v555_v55 = vld [vmem:[%s2934_s4 + $0x68] sm:$0xff]  ;;  %v554_v56 = vld [vmem:[%s2934_s4 + $0x60] sm:$0xff]  ;;  %v553_v57 = vld [vmem:[%s2934_s4 + $0x58] sm:$0xff] }
  0x28   :  { %v552_v58 = vld [vmem:[%s2934_s4 + $0x50] sm:$0xff]  ;;  %v551_v59 = vld [vmem:[%s2934_s4 + $0x48] sm:$0xff]  ;;  %v550_v60 = vld [vmem:[%s2934_s4 + $0x40] sm:$0xff] }
  0x29   :  { %279 = vperm.xlu0 %1786, %v224_v21   ;;  %88 = vperm.xlu1 %1787, %v41_v22   ;;  %v549_v61 = vld [vmem:[%s2934_s4 + $0x38] sm:$0xff]  ;;  %v548_v62 = vld [vmem:[%s2934_s4 + $0x30] sm:$0xff]  ;;  %v493_v63 = vld [vmem:[%s2933_s3 + $0x8] sm:$0xff] }
  0x2a   :  { %v547_v0 = vld [vmem:[%s2934_s4 + $0x28] sm:$0xff]  ;;  %v546_v1 = vld [vmem:[%s2934_s4 + $0x20] sm:$0xff]  ;;  %1707 = vmatprep.mubr.msk.f32.mxu0 %vm692_vm0, %v493_v63  ;;  %v545_v3 = vld [vmem:[%s2934_s4 + $0x18] sm:$0xff] }
  0x2b   :  { %v2162_v2 = vld [vmem:[%s2930_s0] ss:$0 sm:$0xff]  ;;  %v544_v4 = vld [vmem:[%s2934_s4 + $0x10] sm:$0xff]  ;;  %v543_v8 = vld [vmem:[%s2934_s4 + $0x8] sm:$0xff]  ;;  %s1698_s0 = sshll.u32 %s1913_s29, 4  ;;  %s1699_s0 = int_to_ptr.vmem [resolvable:$true] %s1698_s0 }
  0x2c   :  { %v542_v9 = vld [vmem:[%s2934_s4] sm:$0xff]  ;;  %v565_v16 = vld [vmem:[%s2934_s4 + $0xb8] sm:$0xff]  ;;  %v564_v21 = vld [vmem:[%s2934_s4 + $0xb0] sm:$0xff]  ;;  %s1889_s30 = scalar_lea.vmem %s1699_s0, 16  ;;  %p1894_p1 = scmp.lt.s32.totalorder %s1699_s0, %s1699_s0 }
  0x2d   :  { %274 = vperm.xlu0 %1786, %v223_v23   ;;  %83 = vperm.xlu1 %1787, %v40_v24   ;;  %v566_v15 = vld [vmem:[%s2934_s4 + $0xc0] sm:$0xff]  ;;  %v563_v22 = vld [vmem:[%s2934_s4 + $0xa8] sm:$0xff]  ;;  %p1890_p0 = scmp.ne.s32.totalorder %s1699_s0, %s1889_s30 }
  0x2e   :  { %v1170_v63 = vld [vmem:[%s2936_s6 + $0x60] sm:$0xff] }
  0x31   :  { %269 = vperm.xlu0 %1786, %v222_v25   ;;  %78 = vperm.xlu1 %1787, %v39_v26  }
  0x35   :  { %264 = vperm.xlu0 %1786, %v221_v27   ;;  %73 = vperm.xlu1 %1787, %v38_v28   ;;  %v562_v28 = vld [vmem:[%s2934_s4 + $0xa0] sm:$0xff] }
  0x39   :  { %259 = vperm.xlu0 %1786, %v220_v29   ;;  %68 = vperm.xlu1 %1787, %v37_v30   ;;  %v561_v29 = vld [vmem:[%s2934_s4 + $0x98] sm:$0xff] }
  0x3d   :  { %254 = vperm.xlu0 %1786, %v219_v31   ;;  %63 = vperm.xlu1 %1787, %v36_v32  }
  0x41   :  { %249 = vperm.xlu0 %1786, %v218_v33   ;;  %183 = vperm.xlu1 %1787, %v60_v34  }
  0x45   :  { %244 = vperm.xlu0 %1786, %v217_v35   ;;  %178 = vperm.xlu1 %1787, %v59_v36   ;;  %v560_v35 = vld [vmem:[%s2934_s4 + $0x90] sm:$0xff]  ;;  %v559_v36 = vld [vmem:[%s2934_s4 + $0x88] sm:$0xff] }
  0x49   :  { %364 = vperm.xlu0 %1786, %v241_v37   ;;  %173 = vperm.xlu1 %1787, %v58_v38  }
  0x4d   :  { %359 = vperm.xlu0 %1786, %v240_v39   ;;  %168 = vperm.xlu1 %1787, %v57_v40  }
  0x51   :  { %354 = vperm.xlu0 %1786, %v239_v41   ;;  %163 = vperm.xlu1 %1787, %v56_v42  }
  0x55   :  { %349 = vperm.xlu0 %1786, %v238_v43   ;;  %158 = vperm.xlu1 %1787, %v55_v44   ;;  %v558_v44 = vld [vmem:[%s2934_s4 + $0x80] sm:$0xff] }
  0x59   :  { %344 = vperm.xlu0 %1786, %v237_v45   ;;  %153 = vperm.xlu1 %1787, %v54_v46   ;;  %v1173_v45 = vld [vmem:[%s2936_s6 + $0x78] sm:$0xff] }
  0x5d   :  { %339 = vperm.xlu0 %1786, %v236_v47   ;;  %148 = vperm.xlu1 %1787, %v53_v48  }
  0x61   :  { %334 = vperm.xlu0 %1786, %v235_v49   ;;  %143 = vperm.xlu1 %1787, %v52_v50  }
  0x65   :  { %329 = vperm.xlu0 %1786, %v234_v51   ;;  %324 = vperm.xlu1 %1787, %v233_v52  }
  0x69   :  { %644 = vperm.xlu0 %1786, %v557_v53   ;;  %639 = vperm.xlu1 %1787, %v556_v54   ;;  %v1172_v53 = vld [vmem:[%s2936_s6 + $0x70] sm:$0xff]  ;;  %v1171_v54 = vld [vmem:[%s2936_s6 + $0x68] sm:$0xff] }
  0x6d   :  { %634 = vperm.xlu0 %1786, %v555_v55   ;;  %629 = vperm.xlu1 %1787, %v554_v56  }
  0x71   :  { %624 = vperm.xlu0 %1786, %v553_v57   ;;  %619 = vperm.xlu1 %1787, %v552_v58  }
  0x75   :  { %614 = vperm.xlu0 %1786, %v551_v59   ;;  %609 = vperm.xlu1 %1787, %v550_v60  }
  0x79   :  { %604 = vperm.xlu0 %1786, %v549_v61   ;;  %599 = vperm.xlu1 %1787, %v548_v62  }
  0x7d   :  { %594 = vperm.xlu0 %1786, %v547_v0   ;;  %589 = vperm.xlu1 %1787, %v546_v1   ;;  %v1169_v0 = vld [vmem:[%s2936_s6 + $0x58] sm:$0xff] }
  0x80   :  { %v320_v5 = vpop.permute.xlu1 %319  ;;  %v139_v6 = vpop.permute.xlu0 %138 }
  0x81   :  { %v207_v7 = vmul.f32 %v2162_v2, %v139_v6  ;;  %584 = vperm.xlu0 %1786, %v545_v3   ;;  %579 = vperm.xlu1 %1787, %v544_v4  }
  0x83   :  { %v382_v10 = vadd.f32 %v320_v5, %v207_v7 }
  0x84   :  { %v134_v11 = vpop.permute.xlu0 %133  ;;  %v129_v12 = vpop.permute.xlu1 %128 }
  0x85   :  { %v407_v13 = vmul.f32 0.5, %v382_v10  ;;  %574 = vperm.xlu0 %1786, %v543_v8   ;;  %569 = vperm.xlu1 %1787, %v542_v9   ;;  %v206_v17 = vmul.f32 %v2162_v2, %v134_v11  ;;  %v205_v23 = vmul.f32 %v2162_v2, %v129_v12  ;;  %v1168_v10 = vld [vmem:[%s2936_s6 + $0x50] sm:$0xff]  ;;  %v1167_v11 = vld [vmem:[%s2936_s6 + $0x48] sm:$0xff] }
  0x87   :  { %1788 = vtanh.f32 %v407_v13 }
  0x88   :  { %v315_v18 = vpop.permute.xlu0 %314  ;;  %v124_v19 = vpop.permute.xlu1 %123 }
  0x89   :  { %v381_v20 = vadd.f32 %v315_v18, %v206_v17  ;;  %689 = vperm.xlu0 %1786, %v566_v15   ;;  %684 = vperm.xlu1 %1787, %v565_v16   ;;  %v204_v30 = vmul.f32 %v2162_v2, %v124_v19 }
  0x8b   :  { %v406_v24 = vmul.f32 0.5, %v381_v20 }
  0x8c   :  { %v310_v25 = vpop.permute.xlu0 %309  ;;  %v119_v26 = vpop.permute.xlu1 %118 }
  0x8d   :  { %1790 = vtanh.f32 %v406_v24  ;;  %v380_v27 = vadd.f32 %v310_v25, %v205_v23  ;;  %679 = vperm.xlu0 %1786, %v564_v21   ;;  %674 = vperm.xlu1 %1787, %v563_v22   ;;  %v203_v37 = vmul.f32 %v2162_v2, %v119_v26  ;;  %v1166_v21 = vld [vmem:[%s2936_s6 + $0x40] sm:$0xff]  ;;  %v1165_v22 = vld [vmem:[%s2936_s6 + $0x38] sm:$0xff] }
  0x8f   :  { %v405_v31 = vmul.f32 0.5, %v380_v27 }
  0x90   :  { %v305_v32 = vpop.permute.xlu0 %304  ;;  %v114_v33 = vpop.permute.xlu1 %113 }
  0x91   :  { %1792 = vtanh.f32 %v405_v31  ;;  %v379_v34 = vadd.f32 %v305_v32, %v204_v30  ;;  %669 = vperm.xlu0 %1786, %v562_v28   ;;  %664 = vperm.xlu1 %1787, %v561_v29   ;;  %v202_v46 = vmul.f32 %v2162_v2, %v114_v33  ;;  %v1164_v31 = vld [vmem:[%s2936_s6 + $0x30] sm:$0xff]  ;;  %v1163_v32 = vld [vmem:[%s2936_s6 + $0x28] sm:$0xff] }
  0x93   :  { %v404_v38 = vmul.f32 0.5, %v379_v34 }
  0x94   :  { %v1789_v39 = vpop.eup %1788  ;;  %v300_v40 = vpop.permute.xlu0 %299 }
  0x95   :  { %v109_v41 = vpop.permute.xlu1 %108  ;;  %1794 = vtanh.f32 %v404_v38  ;;  %v378_v42 = vadd.f32 %v300_v40, %v203_v37  ;;  %659 = vperm.xlu0 %1786, %v560_v35   ;;  %654 = vperm.xlu1 %1787, %v559_v36   ;;  %v457_v43 = vmul.f32 0.5, %v1789_v39 }
  0x96   :  { %v201_v55 = vmul.f32 %v2162_v2, %v109_v41  ;;  %v1162_v41 = vld [vmem:[%s2936_s6 + $0x20] sm:$0xff] }
  0x97   :  { %v403_v47 = vmul.f32 0.5, %v378_v42  ;;  %v482_v48 = vadd.f32 0.5, %v457_v43  ;;  %v1161_v42 = vld [vmem:[%s2936_s6 + $0x18] sm:$0xff] }
  0x98   :  { %v295_v49 = vpop.permute.xlu0 %294 }
  0x99   :  { %v104_v50 = vpop.permute.xlu1 %103  ;;  %1796 = vtanh.f32 %v403_v47  ;;  %v377_v51 = vadd.f32 %v295_v49, %v202_v46  ;;  %649 = vperm.xlu0 %1786, %v558_v44   ;;  %1260 = vperm.xlu1 %1787, %v1173_v45  }
  0x9a   :  { %v1791_v52 = vpop.eup %1790  ;;  %769 = vmatpush1.msra.mxu0 %v482_v48  ;;  %v200_v1 = vmul.f32 %v2162_v2, %v104_v50 }
  0x9b   :  { %v402_v56 = vmul.f32 0.5, %v377_v51  ;;  %770 = vmatprep.subr.mxu0 %v1912_v14  ;;  %v456_v57 = vmul.f32 0.5, %v1791_v52  ;;  %v1160_v51 = vld [vmem:[%s2936_s6 + $0x10] sm:$0xff]  ;;  %v1159_v52 = vld [vmem:[%s2936_s6 + $0x8] sm:$0xff] }
  0x9c   :  { %v290_v58 = vpop.permute.xlu0 %289 }
  0x9d   :  { %v99_v59 = vpop.permute.xlu1 %98  ;;  %1798 = vtanh.f32 %v402_v56  ;;  %v376_v60 = vadd.f32 %v290_v58, %v201_v55  ;;  %1255 = vperm.xlu0 %1786, %v1172_v53   ;;  %1250 = vperm.xlu1 %1787, %v1171_v54   ;;  %v481_v61 = vadd.f32 0.5, %v456_v57 }
  0x9e   :  { %v1793_v62 = vpop.eup %1792  ;;  %v199_v12 = vmul.f32 %v2162_v2, %v99_v59 }
  0x9f   :  { %v401_v3 = vmul.f32 0.5, %v376_v60  ;;  %771 = vmatpush1.msra.mxu0 %v481_v61  ;;  %v455_v4 = vmul.f32 0.5, %v1793_v62  ;;  %v1158_v61 = vld [vmem:[%s2936_s6] sm:$0xff] }
  0xa0   :  { %v285_v5 = vpop.permute.xlu0 %284  ;;  %772 = vmatprep.subr.mxu0 %v1912_v14  ;;  %v1182_v62 = vld [vmem:[%s2936_s6 + $0xc0] sm:$0xff] }
  0xa1   :  { %v94_v6 = vpop.permute.xlu1 %93  ;;  %1800 = vtanh.f32 %v401_v3  ;;  %v375_v7 = vadd.f32 %v285_v5, %v200_v1  ;;  %1245 = vperm.xlu0 %1786, %v1170_v63   ;;  %1240 = vperm.xlu1 %1787, %v1169_v0   ;;  %v480_v8 = vadd.f32 0.5, %v455_v4 }
  0xa2   :  { %v1795_v9 = vpop.eup %1794  ;;  %v198_v23 = vmul.f32 %v2162_v2, %v94_v6 }
  0xa3   :  { %v400_v13 = vmul.f32 0.5, %v375_v7  ;;  %773 = vmatpush1.msra.mxu0 %v480_v8  ;;  %v454_v15 = vmul.f32 0.5, %v1795_v9  ;;  %v1181_v8 = vld [vmem:[%s2936_s6 + $0xb8] sm:$0xff]  ;;  %v1180_v9 = vld [vmem:[%s2936_s6 + $0xb0] sm:$0xff] }
  0xa4   :  { %v280_v16 = vpop.permute.xlu0 %279  ;;  %774 = vmatprep.subr.mxu0 %v1912_v14 }
  0xa5   :  { %v89_v17 = vpop.permute.xlu1 %88  ;;  %1802 = vtanh.f32 %v400_v13  ;;  %v374_v18 = vadd.f32 %v280_v16, %v199_v12  ;;  %1235 = vperm.xlu0 %1786, %v1168_v10   ;;  %1230 = vperm.xlu1 %1787, %v1167_v11   ;;  %v479_v19 = vadd.f32 0.5, %v454_v15 }
  0xa6   :  { %v1797_v20 = vpop.eup %1796  ;;  %v197_v33 = vmul.f32 %v2162_v2, %v89_v17 }
  0xa7   :  { %v399_v24 = vmul.f32 0.5, %v374_v18  ;;  %775 = vmatpush1.msra.mxu0 %v479_v19  ;;  %v453_v25 = vmul.f32 0.5, %v1797_v20  ;;  %v1179_v19 = vld [vmem:[%s2936_s6 + $0xa8] sm:$0xff]  ;;  %v1178_v20 = vld [vmem:[%s2936_s6 + $0xa0] sm:$0xff] }
  0xa8   :  { %v275_v26 = vpop.permute.xlu0 %274  ;;  %776 = vmatprep.subr.mxu0 %v1912_v14 }
  0xa9   :  { %v84_v27 = vpop.permute.xlu1 %83  ;;  %1804 = vtanh.f32 %v399_v24  ;;  %v373_v28 = vadd.f32 %v275_v26, %v198_v23  ;;  %1225 = vperm.xlu0 %1786, %v1166_v21   ;;  %1220 = vperm.xlu1 %1787, %v1165_v22   ;;  %v478_v29 = vadd.f32 0.5, %v453_v25 }
  0xaa   :  { %v1799_v30 = vpop.eup %1798  ;;  %v196_v43 = vmul.f32 %v2162_v2, %v84_v27 }
  0xab   :  { %v398_v34 = vmul.f32 0.5, %v373_v28  ;;  %777 = vmatpush1.msra.mxu0 %v478_v29  ;;  %v452_v35 = vmul.f32 0.5, %v1799_v30  ;;  %v1177_v29 = vld [vmem:[%s2936_s6 + $0x98] sm:$0xff]  ;;  %v1176_v30 = vld [vmem:[%s2936_s6 + $0x90] sm:$0xff] }
  0xac   :  { %v270_v36 = vpop.permute.xlu0 %269  ;;  %778 = vmatprep.subr.mxu0 %v1912_v14 }
  0xad   :  { %v79_v37 = vpop.permute.xlu1 %78  ;;  %1806 = vtanh.f32 %v398_v34  ;;  %v372_v38 = vadd.f32 %v270_v36, %v197_v33  ;;  %1215 = vperm.xlu0 %1786, %v1164_v31   ;;  %1210 = vperm.xlu1 %1787, %v1163_v32   ;;  %v477_v39 = vadd.f32 0.5, %v452_v35 }
  0xae   :  { %v1801_v40 = vpop.eup %1800  ;;  %v195_v53 = vmul.f32 %v2162_v2, %v79_v37 }
  0xaf   :  { %v397_v44 = vmul.f32 0.5, %v372_v38  ;;  %779 = vmatpush1.msra.mxu0 %v477_v39  ;;  %v451_v45 = vmul.f32 0.5, %v1801_v40  ;;  %v1175_v39 = vld [vmem:[%s2936_s6 + $0x88] sm:$0xff]  ;;  %v1174_v40 = vld [vmem:[%s2936_s6 + $0x80] sm:$0xff] }
  0xb0   :  { %v265_v46 = vpop.permute.xlu0 %264  ;;  %780 = vmatprep.subr.mxu0 %v1912_v14 }
  0xb1   :  { %v74_v47 = vpop.permute.xlu1 %73  ;;  %1808 = vtanh.f32 %v397_v44  ;;  %v371_v48 = vadd.f32 %v265_v46, %v196_v43  ;;  %1205 = vperm.xlu0 %1786, %v1162_v41   ;;  %1200 = vperm.xlu1 %1787, %v1161_v42   ;;  %v476_v49 = vadd.f32 0.5, %v451_v45 }
  0xb2   :  { %v1803_v50 = vpop.eup %1802  ;;  %v194_v63 = vmul.f32 %v2162_v2, %v74_v47 }
  0xb3   :  { %v396_v54 = vmul.f32 0.5, %v371_v48  ;;  %781 = vmatpush1.msra.mxu0 %v476_v49  ;;  %v450_v55 = vmul.f32 0.5, %v1803_v50  ;;  %v1599_v49 = vld [vmem:[#allocation2] sm:$0x1] }
  0xb4   :  { %v260_v56 = vpop.permute.xlu0 %259  ;;  %782 = vmatprep.subr.mxu0 %v1912_v14 }
  0xb5   :  { %v69_v57 = vpop.permute.xlu1 %68  ;;  %1810 = vtanh.f32 %v396_v54  ;;  %v370_v58 = vadd.f32 %v260_v56, %v195_v53  ;;  %1195 = vperm.xlu0 %1786, %v1160_v51   ;;  %1190 = vperm.xlu1 %1787, %v1159_v52   ;;  %v475_v59 = vadd.f32 0.5, %v450_v55 }
  0xb6   :  { %v1805_v60 = vpop.eup %1804  ;;  %v193_v10 = vmul.f32 %v2162_v2, %v69_v57 }
  0xb7   :  { %v395_v0 = vmul.f32 0.5, %v370_v58  ;;  %783 = vmatpush1.msra.mxu0 %v475_v59  ;;  %v449_v1 = vmul.f32 0.5, %v1805_v60 }
  0xb8   :  { %v255_v3 = vpop.permute.xlu0 %254  ;;  %784 = vmatprep.subr.mxu0 %v1912_v14 }
  0xb9   :  { %v64_v4 = vpop.permute.xlu1 %63  ;;  %1812 = vtanh.f32 %v395_v0  ;;  %v369_v5 = vadd.f32 %v255_v3, %v194_v63  ;;  %1185 = vperm.xlu0 %1786, %v1158_v61   ;;  %1305 = vperm.xlu1 %1787, %v1182_v62   ;;  %v474_v6 = vadd.f32 0.5, %v449_v1 }
  0xba   :  { %v1807_v7 = vpop.eup %1806  ;;  %v192_v21 = vmul.f32 %v2162_v2, %v64_v4 }
  0xbb   :  { %v394_v11 = vmul.f32 0.5, %v369_v5  ;;  %785 = vmatpush1.msra.mxu0 %v474_v6  ;;  %v448_v12 = vmul.f32 0.5, %v1807_v7 }
  0xbc   :  { %v250_v13 = vpop.permute.xlu0 %249  ;;  %786 = vmatprep.subr.mxu0 %v1912_v14 }
  0xbd   :  { %v184_v15 = vpop.permute.xlu1 %183  ;;  %1814 = vtanh.f32 %v394_v11  ;;  %v368_v16 = vadd.f32 %v250_v13, %v193_v10  ;;  %1300 = vperm.xlu0 %1786, %v1181_v8   ;;  %1295 = vperm.xlu1 %1787, %v1180_v9   ;;  %v473_v17 = vadd.f32 0.5, %v448_v12 }
  0xbe   :  { %v1809_v18 = vpop.eup %1808  ;;  %v216_v31 = vmul.f32 %v2162_v2, %v184_v15 }
  0xbf   :  { %v393_v22 = vmul.f32 0.5, %v368_v16  ;;  %787 = vmatpush1.msra.mxu0 %v473_v17  ;;  %v447_v23 = vmul.f32 0.5, %v1809_v18 }
  0xc0   :  { %v245_v24 = vpop.permute.xlu0 %244  ;;  %788 = vmatprep.subr.mxu0 %v1912_v14 }
  0xc1   :  { %v179_v25 = vpop.permute.xlu1 %178  ;;  %1816 = vtanh.f32 %v393_v22  ;;  %v367_v26 = vadd.f32 %v245_v24, %v192_v21  ;;  %1290 = vperm.xlu0 %1786, %v1179_v19   ;;  %1285 = vperm.xlu1 %1787, %v1178_v20   ;;  %v472_v27 = vadd.f32 0.5, %v447_v23 }
  0xc2   :  { %v1811_v28 = vpop.eup %1810  ;;  %v215_v41 = vmul.f32 %v2162_v2, %v179_v25 }
  0xc3   :  { %v392_v32 = vmul.f32 0.5, %v367_v26  ;;  %789 = vmatpush1.msra.mxu0 %v472_v27  ;;  %v446_v33 = vmul.f32 0.5, %v1811_v28 }
  0xc4   :  { %v365_v34 = vpop.permute.xlu0 %364  ;;  %790 = vmatprep.subr.mxu0 %v1912_v14 }
  0xc5   :  { %v174_v35 = vpop.permute.xlu1 %173  ;;  %1818 = vtanh.f32 %v392_v32  ;;  %v391_v36 = vadd.f32 %v365_v34, %v216_v31  ;;  %1280 = vperm.xlu0 %1786, %v1177_v29   ;;  %1275 = vperm.xlu1 %1787, %v1176_v30   ;;  %v471_v37 = vadd.f32 0.5, %v446_v33 }
  0xc6   :  { %v1813_v38 = vpop.eup %1812  ;;  %v214_v50 = vmul.f32 %v2162_v2, %v174_v35 }
  0xc7   :  { %v416_v42 = vmul.f32 0.5, %v391_v36  ;;  %791 = vmatpush1.msra.mxu0 %v471_v37  ;;  %v445_v43 = vmul.f32 0.5, %v1813_v38 }
  0xc8   :  { %v360_v44 = vpop.permute.xlu0 %359  ;;  %792 = vmatprep.subr.mxu0 %v1912_v14 }
  0xc9   :  { %v169_v45 = vpop.permute.xlu1 %168  ;;  %1820 = vtanh.f32 %v416_v42  ;;  %v390_v46 = vadd.f32 %v360_v44, %v215_v41  ;;  %1270 = vperm.xlu0 %1786, %v1175_v39   ;;  %1265 = vperm.xlu1 %1787, %v1174_v40   ;;  %v470_v47 = vadd.f32 0.5, %v445_v43 }
  0xca   :  { %v1815_v48 = vpop.eup %1814  ;;  %v213_v58 = vmul.f32 %v2162_v2, %v169_v45 }
  0xcb   :  { %v415_v51 = vmul.f32 0.5, %v390_v46  ;;  %793 = vmatpush1.msra.mxu0 %v470_v47  ;;  %v444_v52 = vmul.f32 0.5, %v1815_v48 }
  0xcc   :  { %v355_v53 = vpop.permute.xlu0 %354  ;;  %794 = vmatprep.subr.mxu0 %v1912_v14 }
  0xcd   :  { %v164_v54 = vpop.permute.xlu1 %163  ;;  %1822 = vtanh.f32 %v415_v51  ;;  %v389_v55 = vadd.f32 %v355_v53, %v214_v50  ;;  %1602 = vperm.xlu0 %1786, %v1599_v49   ;;  %v469_v56 = vadd.f32 0.5, %v444_v52 }
  0xce   :  { %v1817_v57 = vpop.eup %1816  ;;  %v212_v3 = vmul.f32 %v2162_v2, %v164_v54 }
  0xcf   :  { %v414_v59 = vmul.f32 0.5, %v389_v55  ;;  %795 = vmatpush1.msra.mxu0 %v469_v56  ;;  %v443_v60 = vmul.f32 0.5, %v1817_v57  ;;  %v492_v56 = vld [vmem:[%s2933_s3] sm:$0xff]  ;;  %v495_v57 = vld [vmem:[%s2933_s3 + $0x18] sm:$0xff] }
  0xd0   :  { %v350_v61 = vpop.permute.xlu0 %349  ;;  %796 = vmatprep.subr.mxu0 %v1912_v14 }
  0xd1   :  { %v159_v62 = vpop.permute.xlu1 %158  ;;  %1824 = vtanh.f32 %v414_v59  ;;  %v388_v63 = vadd.f32 %v350_v61, %v213_v58  ;;  %v468_v0 = vadd.f32 0.5, %v443_v60  ;;  %v494_v58 = vld [vmem:[%s2933_s3 + $0x10] sm:$0xff]  ;;  %v497_v59 = vld [vmem:[%s2933_s3 + $0x28] sm:$0xff]  ;;  %v496_v60 = vld [vmem:[%s2933_s3 + $0x20] sm:$0xff] }
  0xd2   :  { %v1819_v1 = vpop.eup %1818  ;;  %v211_v11 = vmul.f32 %v2162_v2, %v159_v62  ;;  %v499_v61 = vld [vmem:[%s2933_s3 + $0x38] sm:$0xff]  ;;  %v498_v62 = vld [vmem:[%s2933_s3 + $0x30] sm:$0xff] }
  0xd3   :  { %v413_v4 = vmul.f32 0.5, %v388_v63  ;;  %797 = vmatpush1.msra.mxu0 %v468_v0  ;;  %v442_v5 = vmul.f32 0.5, %v1819_v1  ;;  %v501_v63 = vld [vmem:[%s2933_s3 + $0x48] sm:$0xff]  ;;  %v500_v0 = vld [vmem:[%s2933_s3 + $0x40] sm:$0xff]  ;;  %v503_v1 = vld [vmem:[%s2933_s3 + $0x58] sm:$0xff] }
  0xd4   :  { %v345_v6 = vpop.permute.xlu0 %344  ;;  %798 = vmatprep.subr.mxu0 %v1912_v14 }
  0xd5   :  { %v154_v7 = vpop.permute.xlu1 %153  ;;  %1826 = vtanh.f32 %v413_v4  ;;  %v387_v8 = vadd.f32 %v345_v6, %v212_v3  ;;  %v467_v9 = vadd.f32 0.5, %v442_v5  ;;  %v502_v3 = vld [vmem:[%s2933_s3 + $0x50] sm:$0xff]  ;;  %v505_v4 = vld [vmem:[%s2933_s3 + $0x68] sm:$0xff]  ;;  %v504_v5 = vld [vmem:[%s2933_s3 + $0x60] sm:$0xff] }
  0xd6   :  { %v1821_v10 = vpop.eup %1820  ;;  %v210_v20 = vmul.f32 %v2162_v2, %v154_v7  ;;  %v507_v6 = vld [vmem:[%s2933_s3 + $0x78] sm:$0xff]  ;;  %v506_v7 = vld [vmem:[%s2933_s3 + $0x70] sm:$0xff] }
  0xd7   :  { %v412_v12 = vmul.f32 0.5, %v387_v8  ;;  %799 = vmatpush1.msra.mxu0 %v467_v9  ;;  %v466_v13 = vmul.f32 0.5, %v1821_v10  ;;  %v509_v8 = vld [vmem:[%s2933_s3 + $0x88] sm:$0xff]  ;;  %v508_v9 = vld [vmem:[%s2933_s3 + $0x80] sm:$0xff]  ;;  %v511_v10 = vld [vmem:[%s2933_s3 + $0x98] sm:$0xff] }
  0xd8   :  { %v340_v15 = vpop.permute.xlu0 %339  ;;  %814 = vmatprep.subr.mxu0 %v1912_v14 }
  0xd9   :  { %v149_v16 = vpop.permute.xlu1 %148  ;;  %1828 = vtanh.f32 %v412_v12  ;;  %v386_v17 = vadd.f32 %v340_v15, %v211_v11  ;;  %v491_v18 = vadd.f32 0.5, %v466_v13  ;;  %v510_v11 = vld [vmem:[%s2933_s3 + $0x90] sm:$0xff]  ;;  %v513_v12 = vld [vmem:[%s2933_s3 + $0xa8] sm:$0xff]  ;;  %v512_v13 = vld [vmem:[%s2933_s3 + $0xa0] sm:$0xff] }
  0xda   :  { %v1823_v19 = vpop.eup %1822  ;;  %v209_v28 = vmul.f32 %v2162_v2, %v149_v16  ;;  %v515_v15 = vld [vmem:[%s2933_s3 + $0xb8] sm:$0xff]  ;;  %v514_v16 = vld [vmem:[%s2933_s3 + $0xb0] sm:$0xff] }
  0xdb   :  { %v411_v21 = vmul.f32 0.5, %v386_v17  ;;  %815 = vmatpush2.msra.mxu0 %v491_v18  ;;  %v465_v22 = vmul.f32 0.5, %v1823_v19  ;;  %v517_v17 = vld [vmem:[%s2933_s3 + $0xc8] sm:$0xff]  ;;  %v516_v18 = vld [vmem:[%s2933_s3 + $0xc0] sm:$0xff]  ;;  %v519_v19 = vld [vmem:[%s2933_s3 + $0xd8] sm:$0xff] }
  0xdc   :  { %v335_v23 = vpop.permute.xlu0 %334  ;;  %816 = vmatprep.subr.mxu0 %v1912_v14 }
  0xdd   :  { %v144_v24 = vpop.permute.xlu1 %143  ;;  %1830 = vtanh.f32 %v411_v21  ;;  %v385_v25 = vadd.f32 %v335_v23, %v210_v20  ;;  %v490_v26 = vadd.f32 0.5, %v465_v22  ;;  %v518_v20 = vld [vmem:[%s2933_s3 + $0xd0] sm:$0xff]  ;;  %v521_v21 = vld [vmem:[%s2933_s3 + $0xe8] sm:$0xff]  ;;  %v520_v22 = vld [vmem:[%s2933_s3 + $0xe0] sm:$0xff] }
  0xde   :  { %v1825_v27 = vpop.eup %1824  ;;  %v208_v30 = vmul.f32 %v2162_v2, %v144_v24  ;;  %v523_v23 = vld [vmem:[%s2933_s3 + $0xf8] sm:$0xff]  ;;  %v522_v24 = vld [vmem:[%s2933_s3 + $0xf0] sm:$0xff] }
  0xdf   :  { %v410_v29 = vmul.f32 0.5, %v385_v25  ;;  %817 = vmatpush2.msra.mxu0 %v490_v26  ;;  %v464_v31 = vmul.f32 0.5, %v1825_v27  ;;  %v525_v25 = vld [vmem:[%s2933_s3 + $0x108] sm:$0xff]  ;;  %v524_v26 = vld [vmem:[%s2933_s3 + $0x100] sm:$0xff]  ;;  %v527_v27 = vld [vmem:[%s2933_s3 + $0x118] sm:$0xff] }
  0xe0   :  { %v330_v32 = vpop.permute.xlu0 %329  ;;  %818 = vmatprep.subr.mxu0 %v1912_v14 }
  0xe1   :  { %v325_v33 = vpop.permute.xlu1 %324  ;;  %1832 = vtanh.f32 %v410_v29  ;;  %v384_v34 = vadd.f32 %v330_v32, %v209_v28  ;;  %v489_v36 = vadd.f32 0.5, %v464_v31  ;;  %v526_v28 = vld [vmem:[%s2933_s3 + $0x110] sm:$0xff]  ;;  %v529_v29 = vld [vmem:[%s2933_s3 + $0x128] sm:$0xff]  ;;  %v531_v31 = vld [vmem:[%s2933_s3 + $0x138] sm:$0xff] }
  0xe2   :  { %v383_v35 = vadd.f32 %v325_v33, %v208_v30  ;;  %v1827_v37 = vpop.eup %1826  ;;  %v528_v30 = vld [vmem:[%s2933_s3 + $0x120] sm:$0xff]  ;;  %v530_v32 = vld [vmem:[%s2933_s3 + $0x130] sm:$0xff]  ;;  %v533_v33 = vld [vmem:[%s2933_s3 + $0x148] sm:$0xff] }
  0xe3   :  { %v409_v38 = vmul.f32 0.5, %v384_v34  ;;  %819 = vmatpush2.msra.mxu0 %v489_v36  ;;  %v463_v40 = vmul.f32 0.5, %v1827_v37  ;;  %v532_v34 = vld [vmem:[%s2933_s3 + $0x140] sm:$0xff]  ;;  %v534_v36 = vld [vmem:[%s2933_s3 + $0x150] sm:$0xff]  ;;  %v537_v37 = vld [vmem:[%s2933_s3 + $0x168] sm:$0xff] }
  0xe4   :  { %v408_v39 = vmul.f32 0.5, %v383_v35  ;;  %820 = vmatprep.subr.mxu0 %v1912_v14  ;;  %v535_v35 = vld [vmem:[%s2933_s3 + $0x158] sm:$0xff] }
  0xe5   :  { %1834 = vtanh.f32 %v409_v38  ;;  %v488_v41 = vadd.f32 0.5, %v463_v40  ;;  %v1605_v38 = vlaneseq  ;;  %v539_v40 = vld [vmem:[%s2933_s3 + $0x178] sm:$0xff] }
  0xe6   :  { %v1829_v2 = vpop.eup %1828  ;;  %1836 = vtanh.f32 %v408_v39  ;;  %v536_v39 = vld [vmem:[%s2933_s3 + $0x160] sm:$0xff] }
  0xe7   :  { %821 = vmatpush2.msra.mxu0 %v488_v41  ;;  %v462_v42 = vmul.f32 0.5, %v1829_v2  ;;  %v2488_v41 = vshrl.u32 %v1605_v38, 7 }
  0xe8   :  { %822 = vmatprep.subr.mxu0 %v1912_v14 }
  0xe9   :  { %v487_v43 = vadd.f32 0.5, %v462_v42  ;;  %v1616_v2 = vsub.s32 1, %v2488_v41  ;;  %v538_v42 = vld [vmem:[%s2933_s3 + $0x170] sm:$0xff] }
  0xea   :  { %v1831_v44 = vpop.eup %1830 }
  0xeb   :  { %823 = vmatpush2.msra.mxu0 %v487_v43  ;;  %v461_v45 = vmul.f32 0.5, %v1831_v44  ;;  %v1598_v43 = vld [vmem:[%s2937_s7] sm:$0x3]  ;;  %v541_v44 = vld [vmem:[%s2933_s3 + $0x188] sm:$0xff] }
  0xec   :  { %824 = vmatprep.subr.mxu0 %v1912_v14 }
  0xed   :  { %v486_v46 = vadd.f32 0.5, %v461_v45  ;;  %v1617_v45 = vrot.slane %v1598_v43, %v1616_v2 }
  0xee   :  { %v1833_v47 = vpop.eup %1832 }
  0xef   :  { %825 = vmatpush2.msra.mxu0 %v486_v46  ;;  %v460_v48 = vmul.f32 0.5, %v1833_v47  ;;  %v540_v46 = vld [vmem:[%s2933_s3 + $0x180] sm:$0xff] }
  0xf0   :  { %826 = vmatprep.subr.mxu0 %v1912_v14 }
  0xf1   :  { %v485_v49 = vadd.f32 0.5, %v460_v48 }
  0xf2   :  { %v1835_v50 = vpop.eup %1834 }
  0xf3   :  { %v1837_v51 = vpop.eup %1836  ;;  %827 = vmatpush2.msra.mxu0 %v485_v49  ;;  %v459_v52 = vmul.f32 0.5, %v1835_v50 }
  0xf4   :  { %828 = vmatprep.subr.mxu0 %v1912_v14  ;;  %v458_v53 = vmul.f32 0.5, %v1837_v51 }
  0xf5   :  { %v484_v54 = vadd.f32 0.5, %v459_v52  ;;  %v1109_v52 = vld [vmem:[%s2935_s5 + $0x8] sm:$0xff] }
  0xf6   :  { %v483_v55 = vadd.f32 0.5, %v458_v53  ;;  %1757 = vmatprep.mubr.msk.f32.mxu1 %vm692_vm0, %v1109_v52 }
  0xf7   :  { %829 = vmatpush2.msra.mxu0 %v484_v54 }
  0xf8   :  { %830 = vmatprep.subr.mxu0 %v1912_v14 }
  0xf9   :  { %831 = vmatpush2.msra.mxu0 %v483_v55 }
  0xfa   :  { %833 = vmatmul.mubr.f32.vlgmr.msra.gmra.mxu0 %v492_v56  ;;  %1621 = vmatprep.subr.mxu0 %v1912_v14 }
  0xfb   :  { %1708 = vmatprep.mubr.msk.f32.mxu0 %vm692_vm0, %v495_v57 }
  0xfe   :  { %838 = vmatmul.mubr.f32.gmra.mxu0 %v494_v58 }
  0xff   :  { %1709 = vmatprep.mubr.msk.f32.mxu0 %vm692_vm0, %v497_v59 }
 0x102   :  { %843 = vmatmul.mubr.f32.gmra.mxu0 %v496_v60 }
 0x103   :  { %1710 = vmatprep.mubr.msk.f32.mxu0 %vm692_vm0, %v499_v61 }
 0x106   :  { %848 = vmatmul.mubr.f32.gmra.mxu0 %v498_v62 }
 0x107   :  { %1711 = vmatprep.mubr.msk.f32.mxu0 %vm692_vm0, %v501_v63  ;;  %v645_v63 = vpop.permute.xlu0 %644 }
 0x10a   :  { %853 = vmatmul.mubr.f32.gmra.mxu0 %v500_v0 }
 0x10b   :  { %1712 = vmatprep.mubr.msk.f32.mxu0 %vm692_vm0, %v503_v1 }
 0x10e   :  { %858 = vmatmul.mubr.f32.gmra.mxu0 %v502_v3  ;;  %v640_v3 = vpop.permute.xlu1 %639 }
 0x10f   :  { %1713 = vmatprep.mubr.msk.f32.mxu0 %vm692_vm0, %v505_v4 }
 0x112   :  { %863 = vmatmul.mubr.f32.gmra.mxu0 %v504_v5  ;;  %v635_v5 = vpop.permute.xlu0 %634 }
 0x113   :  { %1714 = vmatprep.mubr.msk.f32.mxu0 %vm692_vm0, %v507_v6 }
 0x116   :  { %868 = vmatmul.mubr.f32.gmra.mxu0 %v506_v7 }
 0x117   :  { %1715 = vmatprep.mubr.msk.f32.mxu0 %vm692_vm0, %v509_v8  ;;  %v630_v8 = vpop.permute.xlu1 %629 }
 0x11a   :  { %873 = vmatmul.mubr.f32.gmra.mxu0 %v508_v9 }
 0x11b   :  { %1716 = vmatprep.mubr.msk.f32.mxu0 %vm692_vm0, %v511_v10  ;;  %v625_v10 = vpop.permute.xlu0 %624 }
 0x11e   :  { %878 = vmatmul.mubr.f32.gmra.mxu0 %v510_v11 }
 0x11f   :  { %1717 = vmatprep.mubr.msk.f32.mxu0 %vm692_vm0, %v513_v12 }
 0x122   :  { %883 = vmatmul.mubr.f32.gmra.mxu0 %v512_v13  ;;  %v620_v13 = vpop.permute.xlu1 %619 }
 0x123   :  { %1718 = vmatprep.mubr.msk.f32.mxu0 %vm692_vm0, %v515_v15 }
 0x126   :  { %888 = vmatmul.mubr.f32.gmra.mxu0 %v514_v16  ;;  %v615_v16 = vpop.permute.xlu0 %614 }
 0x127   :  { %1719 = vmatprep.mubr.msk.f32.mxu0 %vm692_vm0, %v517_v17 }
 0x12a   :  { %893 = vmatmul.mubr.f32.gmra.mxu0 %v516_v18 }
 0x12b   :  { %1720 = vmatprep.mubr.msk.f32.mxu0 %vm692_vm0, %v519_v19  ;;  %v610_v19 = vpop.permute.xlu1 %609 }
 0x12e   :  { %898 = vmatmul.mubr.f32.gmra.mxu0 %v518_v20 }
 0x12f   :  { %1721 = vmatprep.mubr.msk.f32.mxu0 %vm692_vm0, %v521_v21  ;;  %v605_v21 = vpop.permute.xlu0 %604 }
 0x132   :  { %903 = vmatmul.mubr.f32.gmra.mxu0 %v520_v22 }
 0x133   :  { %1722 = vmatprep.mubr.msk.f32.mxu0 %vm692_vm0, %v523_v23 }
 0x136   :  { %908 = vmatmul.mubr.f32.gmra.mxu0 %v522_v24 }
 0x137   :  { %1723 = vmatprep.mubr.msk.f32.mxu0 %vm692_vm0, %v525_v25  ;;  %v600_v25 = vpop.permute.xlu1 %599 }
 0x13a   :  { %913 = vmatmul.mubr.f32.gmra.mxu0 %v524_v26 }
 0x13b   :  { %1724 = vmatprep.mubr.msk.f32.mxu0 %vm692_vm0, %v527_v27 }
 0x13e   :  { %918 = vmatmul.mubr.f32.gmra.mxu0 %v526_v28 }
 0x13f   :  { %1725 = vmatprep.mubr.msk.f32.mxu0 %vm692_vm0, %v529_v29 }
 0x142   :  { %923 = vmatmul.mubr.f32.gmra.mxu0 %v528_v30 }
 0x143   :  { %1726 = vmatprep.mubr.msk.f32.mxu0 %vm692_vm0, %v531_v31 }
 0x146   :  { %928 = vmatmul.mubr.f32.gmra.mxu0 %v530_v32  ;;  %v595_v32 = vpop.permute.xlu0 %594 }
 0x147   :  { %1727 = vmatprep.mubr.msk.f32.mxu0 %vm692_vm0, %v533_v33 }
 0x14a   :  { %933 = vmatmul.mubr.f32.gmra.mxu0 %v532_v34  ;;  %v585_v52 = vpop.permute.xlu0 %584 }
 0x14b   :  { %1728 = vmatprep.mubr.msk.f32.mxu0 %vm692_vm0, %v535_v35 }
 0x14e   :  { %938 = vmatmul.mubr.f32.gmra.mxu0 %v534_v36 }
 0x14f   :  { %1729 = vmatprep.mubr.msk.f32.mxu0 %vm692_vm0, %v537_v37 }
 0x152   :  { %943 = vmatmul.mubr.f32.gmra.mxu0 %v536_v39 }
 0x153   :  { %1730 = vmatprep.mubr.msk.f32.mxu0 %vm692_vm0, %v539_v40  ;;  %v590_v40 = vpop.permute.xlu1 %589 }
 0x156   :  { %948 = vmatmul.mubr.f32.gmra.mxu0 %v538_v42 }
 0x157   :  { %1731 = vmatprep.mubr.msk.f32.mxu0 %vm692_vm0, %v541_v44 }
 0x15a   :  { %953 = vmatmul.mubr.f32.gmra.mxu0 %v540_v46 }
 0x15b   :  { %1782 = vmatprep.mubr.msk.f32.mxu0 %vm692_vm0, %v1617_v45 }
 0x1ba   :  { %v2506_v47 = vpop.f32.mrf.mxu0 }
 0x1bc   :  { %v836_v48 = vpop.f32.mrf.mxu0 }
 0x1be   :  { %v2508_v49 = vpop.f32.mrf.mxu0 }
 0x1c0   :  { %v841_v50 = vpop.f32.mrf.mxu0 }
 0x1c2   :  { %v2510_v51 = vpop.f32.mrf.mxu0 }
 0x1c4   :  { %v846_v53 = vpop.f32.mrf.mxu0 }
 0x1c6   :  { %v2516_v54 = vpop.f32.mrf.mxu0 }
 0x1c8   :  { %v851_v55 = vpop.f32.mrf.mxu0 }
 0x1ca   :  { %v2518_v56 = vpop.f32.mrf.mxu0 }
 0x1cc   :  { %v856_v57 = vpop.f32.mrf.mxu0 }
 0x1ce   :  { %v2520_v58 = vpop.f32.mrf.mxu0 }
 0x1d0   :  { %v861_v59 = vpop.f32.mrf.mxu0 }
 0x1d2   :  { %v864_v60 = vpop.f32.mrf.mxu0 }
 0x1d4   :  { %v866_v61 = vpop.f32.mrf.mxu0 }
 0x1d5   :  { %v2549_v61 = vadd.f32 %v864_v60, %v600_v25 }
 0x1d6   :  { %v869_v62 = vpop.f32.mrf.mxu0 }
 0x1d7   :  { %v2546_v55 = vadd.f32 %v869_v62, %v605_v21  ;;  %v989_v60 = vmin.f32 %v2549_v61, 0.0  ;;  %vm964_vm10 = vcmp.gt.f32.partialorder %v2549_v61, 0.0 }
 0x1d8   :  { %v871_v0 = vpop.f32.mrf.mxu0 }
 0x1d9   :  { %v990_v62 = vmin.f32 %v2546_v55, 0.0  ;;  %vm965_vm9 = vcmp.gt.f32.partialorder %v2546_v55, 0.0 }
 0x1da   :  { %v874_v1 = vpop.f32.mrf.mxu0 }
 0x1db   :  { %v2541_v44 = vadd.f32 %v874_v1, %v610_v19  ;;  %v580_v1 = vpop.permute.xlu1 %579 }
 0x1dc   :  { %v876_v4 = vpop.f32.mrf.mxu0 }
 0x1dd   :  { %v2555_v4 = vadd.f32 %v2520_v58, %v595_v32  ;;  %vm966_vm8 = vcmp.gt.f32.partialorder %v2541_v44, 0.0 }
 0x1de   :  { %v879_v6 = vpop.f32.mrf.mxu0 }
 0x1df   :  { %v2537_v2 = vadd.f32 %v879_v6, %v615_v16  ;;  %v988_v58 = vmin.f32 %v2555_v4, 0.0  ;;  %v2569_v16 = vadd.f32 %v2510_v51, %v580_v1  ;;  %vm963_vm11 = vcmp.gt.f32.partialorder %v2555_v4, 0.0 }
 0x1e0   :  { %v881_v7 = vpop.f32.mrf.mxu0 }
 0x1e1   :  { %v992_v57 = vmin.f32 %v2537_v2, 0.0  ;;  %v575_v7 = vpop.permute.xlu0 %574  ;;  %vm967_vm7 = vcmp.gt.f32.partialorder %v2537_v2, 0.0  ;;  %vm960_vm14 = vcmp.gt.f32.partialorder %v2569_v16, 0.0 }
 0x1e2   :  { %v884_v9 = vpop.f32.mrf.mxu0 }
 0x1e3   :  { %v2532_v34 = vadd.f32 %v884_v9, %v620_v13  ;;  %v1026_v6 = vmul.f32 1.442695, %v992_v57  ;;  %v570_v13 = vpop.permute.xlu1 %569 }
 0x1e4   :  { %v886_v11 = vpop.f32.mrf.mxu0 }
 0x1e5   :  { %v993_v46 = vmin.f32 %v2532_v34, 0.0  ;;  %v2565_v11 = vadd.f32 %v2516_v54, %v585_v52  ;;  %v2577_v54 = vadd.f32 %v2508_v49, %v575_v7  ;;  %vm968_vm6 = vcmp.gt.f32.partialorder %v2532_v34, 0.0 }
 0x1e6   :  { %v889_v12 = vpop.f32.mrf.mxu0 }
 0x1e7   :  { %v2529_v30 = vadd.f32 %v889_v12, %v625_v10  ;;  %v986_v21 = vmin.f32 %v2565_v11, 0.0  ;;  %v685_v32 = vpop.permute.xlu1 %684  ;;  %vm961_vm13 = vcmp.gt.f32.partialorder %v2565_v11, 0.0  ;;  %vm959_vm15 = vcmp.gt.f32.partialorder %v2577_v54, 0.0 }
 0x1e8   :  { %v891_v15 = vpop.f32.mrf.mxu0 }
 0x1e9   :  { %v994_v42 = vmin.f32 %v2529_v30, 0.0  ;;  %v1022_v15 = vmul.f32 1.442695, %v990_v62  ;;  %vm969_vm5 = vcmp.gt.f32.partialorder %v2529_v30, 0.0 }
 0x1ea   :  { %v894_v17 = vpop.f32.mrf.mxu0 }
 0x1eb   :  { %v2524_v26 = vadd.f32 %v894_v17, %v630_v8  ;;  %v1030_v59 = vmul.f32 1.442695, %v994_v42  ;;  %v2559_v8 = vadd.f32 %v2518_v56, %v590_v40  ;;  %v1020_v17 = vmul.f32 1.442695, %v989_v60  ;;  %v675_v1 = vpop.permute.xlu1 %674 }
 0x1ec   :  { %v896_v18 = vpop.f32.mrf.mxu0 }
 0x1ed   :  { %v995_v35 = vmin.f32 %v2524_v26, 0.0  ;;  %v987_v56 = vmin.f32 %v2559_v8, 0.0  ;;  %vm970_vm4 = vcmp.gt.f32.partialorder %v2524_v26, 0.0  ;;  %vm962_vm12 = vcmp.gt.f32.partialorder %v2559_v8, 0.0 }
 0x1ee   :  { %v899_v20 = vpop.f32.mrf.mxu0 }
 0x1ef   :  { %v2522_v22 = vadd.f32 %v899_v20, %v635_v5  ;;  %v1032_v48 = vmul.f32 1.442695, %v995_v35  ;;  %v2574_v20 = vpop.permute.xlu0 %689 }
 0x1f0   :  { %v901_v23 = vpop.f32.mrf.mxu0 }
 0x1f1   :  { %v996_v28 = vmin.f32 %v2522_v22, 0.0  ;;  %v1018_v23 = vmul.f32 1.442695, %v988_v58  ;;  %vm971_vm3 = vcmp.gt.f32.partialorder %v2522_v22, 0.0 }
 0x1f2   :  { %v904_v24 = vpop.f32.mrf.mxu0 }
 0x1f3   :  { %v2526_v27 = vadd.f32 %v904_v24, %v640_v3  ;;  %v1034_v38 = vmul.f32 1.442695, %v996_v28  ;;  %v1028_v3 = vmul.f32 1.442695, %v993_v46  ;;  %v985_v28 = vmin.f32 %v2569_v16, 0.0 }
 0x1f4   :  { %v906_v29 = vpop.f32.mrf.mxu0 }
 0x1f5   :  { %v997_v31 = vmin.f32 %v2526_v27, 0.0  ;;  %v1016_v29 = vmul.f32 1.442695, %v987_v56  ;;  %vm972_vm2 = vcmp.gt.f32.partialorder %v2526_v27, 0.0 }
 0x1f6   :  { %v909_v33 = vpop.f32.mrf.mxu0 }
 0x1f7   :  { %v1036_v36 = vmul.f32 1.442695, %v997_v31  ;;  %v2535_v37 = vadd.f32 %v909_v33, %v645_v63  ;;  %v991_v63 = vmin.f32 %v2541_v44, 0.0  ;;  %v2584_v33 = vadd.f32 %v2506_v47, %v570_v13 }
 0x1f8   :  { %v911_v39 = vpop.f32.mrf.mxu0 }
 0x1f9   :  { %v998_v43 = vmin.f32 %v2535_v37, 0.0  ;;  %1838 = vpow2.f32 %v1036_v36  ;;  %v1024_v9 = vmul.f32 1.442695, %v991_v63  ;;  %v1014_v39 = vmul.f32 1.442695, %v986_v21  ;;  %v665_v21 = vpop.permute.xlu1 %664 }
 0x1fa   :  { %v2543_v45 = vpop.f32.mrf.mxu0  ;;  %1840 = vpow2.f32 %v1034_v38  ;;  %v984_v38 = vmin.f32 %v2577_v54, 0.0  ;;  %vm973_vm1 = vcmp.gt.f32.partialorder %v2535_v37, 0.0  ;;  %v983_v47 = vmin.f32 %v2584_v33, 0.0 }
 0x1fb   :  { %v1038_v50 = vmul.f32 1.442695, %v998_v43 }
 0x1fc   :  { %v916_v53 = vpop.f32.mrf.mxu0  ;;  %v1010_v63 = vmul.f32 1.442695, %v984_v38  ;;  %v1008_v7 = vmul.f32 1.442695, %v983_v47 }
 0x1fd   :  { %1842 = vpow2.f32 %v1038_v50  ;;  %v1012_v50 = vmul.f32 1.442695, %v985_v28 }
 0x1fe   :  { %v2552_v0 = vpop.f32.mrf.mxu0  ;;  %1844 = vpow2.f32 %v1032_v48  ;;  %v680_v48 = vpop.permute.xlu0 %679 }
 0x1ff   :  { %1846 = vpow2.f32 %v1030_v59 }
 0x200   :  { %v921_v5 = vpop.f32.mrf.mxu0  ;;  %1848 = vpow2.f32 %v1028_v3 }
 0x201   :  { %1850 = vpow2.f32 %v1026_v6 }
 0x202   :  { %v2562_v10 = vpop.f32.mrf.mxu0  ;;  %1852 = vpow2.f32 %v1024_v9  ;;  %v670_v58 = vpop.permute.xlu0 %669 }
 0x203   :  { %1854 = vpow2.f32 %v1022_v15 }
 0x204   :  { %v926_v12 = vpop.f32.mrf.mxu0  ;;  %1856 = vpow2.f32 %v1020_v17 }
 0x205   :  { %1858 = vpow2.f32 %v1018_v23 }
 0x206   :  { %v2572_v18 = vpop.f32.mrf.mxu0  ;;  %v1839_v19 = vpop.eup %1838  ;;  %1860 = vpow2.f32 %v1016_v29 }
 0x207   :  { %v1841_v25 = vpop.eup %1840  ;;  %v1746_v49 = vadd.f32 -1.0, %v1839_v19  ;;  %1862 = vpow2.f32 %v1014_v39 }
 0x208   :  { %v931_v24 = vpop.f32.mrf.mxu0  ;;  %v1745_v43 = vadd.f32 -1.0, %v1841_v25  ;;  %1864 = vpow2.f32 %v1012_v50 }
 0x209   :  { %v1097_v53 = vsel %vm972_vm2, %v2526_v27, %v1746_v49  ;;  %1866 = vpow2.f32 %v1010_v63 }
 0x20a   :  { %v1843_v51 = vpop.eup %1842  ;;  %v2581_v31 = vpop.f32.mrf.mxu0  ;;  %v1096_v3 = vsel %vm971_vm3, %v2522_v22, %v1745_v43  ;;  %1868 = vpow2.f32 %v1008_v7 }
 0x20b   :  { %v1747_v35 = vadd.f32 -1.0, %v1843_v51  ;;  %v1845_v36 = vpop.eup %1844  ;;  %v2615_v29 = vadd.f32 %v2581_v31, %v670_v58 }
 0x20c   :  { %v936_v40 = vpop.f32.mrf.mxu0  ;;  %v1847_v46 = vpop.eup %1846  ;;  %v1744_v57 = vadd.f32 -1.0, %v1845_v36 }
 0x20d   :  { %v1098_v42 = vsel %vm973_vm1, %v2535_v37, %v1747_v35  ;;  %v1849_v59 = vpop.eup %1848  ;;  %v1743_v5 = vadd.f32 -1.0, %v1847_v46  ;;  %v1003_v47 = vmin.f32 %v2615_v29, 0.0  ;;  %vm958_vm1 = vcmp.gt.f32.partialorder %v2584_v33, 0.0 }
 0x20e   :  { %v939_v52 = vpop.f32.mrf.mxu0  ;;  %1384 = vmatpush1.msra.mxu1 %v1098_v42  ;;  %v1851_v62 = vpop.eup %1850  ;;  %v1095_v60 = vsel %vm970_vm4, %v2524_v26, %v1744_v57  ;;  %v1742_v9 = vadd.f32 -1.0, %v1849_v59  ;;  %v2622_v42 = vadd.f32 %v2572_v18, %v665_v21 }
 0x20f   :  { %1385 = vmatprep.subr.mxu1 %v1912_v14  ;;  %v1853_v27 = vpop.eup %1852  ;;  %v1094_v22 = vsel %vm969_vm5, %v2529_v30, %v1743_v5  ;;  %v1741_v15 = vadd.f32 -1.0, %v1851_v62  ;;  %v2605_v23 = vadd.f32 %v939_v52, %v675_v1  ;;  %v655_v52 = vpop.permute.xlu1 %654 }
 0x210   :  { %v941_v37 = vpop.f32.mrf.mxu0  ;;  %1386 = vmatpush1.msra.mxu1 %v1097_v53  ;;  %v1855_v56 = vpop.eup %1854  ;;  %v1740_v26 = vadd.f32 -1.0, %v1853_v27  ;;  %v1093_v25 = vsel %vm968_vm6, %v2532_v34, %v1742_v9  ;;  %v2639_v57 = vadd.f32 %v2552_v0, %v655_v52  ;;  %v1048_v27 = vmul.f32 1.442695, %v1003_v47  ;;  %v1111_v52 = vld [vmem:[%s2935_s5 + $0x18] sm:$0xff]  ;;  %v1113_v47 = vld [vmem:[%s2935_s5 + $0x28] sm:$0xff] }
 0x211   :  { %1387 = vmatprep.subr.mxu1 %v1912_v14  ;;  %v1857_v19 = vpop.eup %1856  ;;  %v1739_v49 = vadd.f32 -1.0, %v1855_v56  ;;  %v660_v34 = vpop.permute.xlu0 %659  ;;  %v1004_v31 = vmin.f32 %v2605_v23, 0.0  ;;  %vm979_vm5 = vcmp.gt.f32.partialorder %v2605_v23, 0.0  ;;  %vm978_vm6 = vcmp.gt.f32.partialorder %v2615_v29, 0.0 }
 0x212   :  { %v944_v6 = vpop.f32.mrf.mxu0  ;;  %1388 = vmatpush1.msra.mxu1 %v1096_v3  ;;  %v1859_v28 = vpop.eup %1858  ;;  %v1091_v38 = vsel %vm966_vm8, %v2541_v44, %v1740_v26  ;;  %v1738_v39 = vadd.f32 -1.0, %v1857_v19  ;;  %v2632_v18 = vadd.f32 %v2562_v10, %v660_v34  ;;  %v1002_v10 = vmin.f32 %v2622_v42, 0.0 }
 0x213   :  { %1389 = vmatprep.subr.mxu1 %v1912_v14  ;;  %v2599_v12 = vadd.f32 %v944_v6, %v680_v48  ;;  %v1861_v40 = vpop.eup %1860  ;;  %v1737_v44 = vadd.f32 -1.0, %v1859_v28  ;;  %v1090_v53 = vsel %vm965_vm9, %v2546_v55, %v1739_v49  ;;  %v1050_v1 = vmul.f32 1.442695, %v1004_v31 }
 0x214   :  { %v946_v13 = vpop.f32.mrf.mxu0  ;;  %1390 = vmatpush1.msra.mxu1 %v1095_v60  ;;  %v1863_v50 = vpop.eup %1862  ;;  %v1089_v59 = vsel %vm964_vm10, %v2549_v61, %v1738_v39  ;;  %v1736_v63 = vadd.f32 -1.0, %v1861_v40  ;;  %v1001_v6 = vmin.f32 %v2632_v18, 0.0  ;;  %v1000_v60 = vmin.f32 %v2639_v57, 0.0 }
 0x215   :  { %1391 = vmatprep.subr.mxu1 %v1912_v14  ;;  %v1005_v30 = vmin.f32 %v2599_v12, 0.0  ;;  %v1865_v37 = vpop.eup %1864  ;;  %v650_v5 = vpop.permute.xlu0 %649  ;;  %v1088_v55 = vsel %vm963_vm11, %v2555_v4, %v1737_v44  ;;  %v1735_v0 = vadd.f32 -1.0, %v1863_v50  ;;  %v1046_v9 = vmul.f32 1.442695, %v1002_v10  ;;  %v1118_v10 = vld [vmem:[%s2935_s5 + $0x50] sm:$0xff] }
 0x216   :  { %v949_v17 = vpop.f32.mrf.mxu0  ;;  %1392 = vmatpush1.msra.mxu1 %v1094_v22  ;;  %v1867_v62 = vpop.eup %1866  ;;  %v2647_v61 = vadd.f32 %v2543_v45, %v650_v5  ;;  %v1734_v7 = vadd.f32 -1.0, %v1865_v37  ;;  %v1087_v4 = vsel %vm962_vm12, %v2559_v8, %v1736_v63  ;;  %v1044_v22 = vmul.f32 1.442695, %v1001_v6  ;;  %v1116_v63 = vld [vmem:[%s2935_s5 + $0x40] sm:$0xff]  ;;  %v1119_v37 = vld [vmem:[%s2935_s5 + $0x58] sm:$0xff]  ;;  %v1126_v6 = vld [vmem:[%s2935_s5 + $0x90] sm:$0xff] }
 0x217   :  { %v2607_v24 = vadd.f32 %v949_v17, %v685_v32  ;;  %1393 = vmatprep.subr.mxu1 %v1912_v14  ;;  %v1092_v32 = vsel %vm967_vm7, %v2537_v2, %v1741_v15  ;;  %v1052_v2 = vmul.f32 1.442695, %v1005_v30  ;;  %v1869_v45 = vpop.eup %1868  ;;  %v1733_v58 = vadd.f32 -1.0, %v1867_v62  ;;  %v1123_v5 = vld [vmem:[%s2935_s5 + $0x78] sm:$0xff]  ;;  %v1124_v62 = vld [vmem:[%s2935_s5 + $0x80] sm:$0xff] }
 0x218   :  { %v951_v51 = vpop.f32.mrf.mxu0  ;;  %1394 = vmatpush1.msra.mxu1 %v1093_v25  ;;  %v999_v13 = vmin.f32 %v2647_v61, 0.0  ;;  %v1086_v15 = vsel %vm961_vm13, %v2565_v11, %v1735_v0  ;;  %v1042_v56 = vmul.f32 1.442695, %v1000_v60  ;;  %v1085_v8 = vsel %vm960_vm14, %v2569_v16, %v1734_v7  ;;  %v1125_v0 = vld [vmem:[%s2935_s5 + $0x88] sm:$0xff]  ;;  %v1128_v7 = vld [vmem:[%s2935_s5 + $0xa0] sm:$0xff]  ;;  %v1131_v60 = vld [vmem:[%s2935_s5 + $0xb8] sm:$0xff] }
 0x219   :  { %v1006_v35 = vmin.f32 %v2607_v24, 0.0  ;;  %1395 = vmatprep.subr.mxu1 %v1912_v14  ;;  %v1732_v17 = vadd.f32 -1.0, %v1869_v45  ;;  %v1084_v19 = vsel %vm959_vm15, %v2577_v54, %v1733_v58  ;;  %vm981_vm3 = vcmp.gt.f32.partialorder %v2607_v24, 0.0  ;;  %v1132_v45 = vld [vmem:[%s2935_s5 + $0xc0] sm:$0xff]  ;;  %v1135_v58 = vld [vmem:[%s2935_s5 + $0xd8] sm:$0xff] }
 0x21a   :  { %v954_v36 = vpop.f32.mrf.mxu0  ;;  %1396 = vmatpush1.msra.mxu1 %v1092_v32  ;;  %v1040_v26 = vmul.f32 1.442695, %v999_v13  ;;  %vm980_vm4 = vcmp.gt.f32.partialorder %v2599_v12, 0.0  ;;  %vm977_vm7 = vcmp.gt.f32.partialorder %v2622_v42, 0.0  ;;  %vm976_vm8 = vcmp.gt.f32.partialorder %v2632_v18, 0.0  ;;  %v1134_v13 = vld [vmem:[%s2935_s5 + $0xd0] sm:$0xff] }
 0x21b   :  { %v1054_v43 = vmul.f32 1.442695, %v1006_v35  ;;  %v2626_v46 = vadd.f32 %v954_v36, %v2574_v20  ;;  %1397 = vmatprep.subr.mxu1 %v1912_v14  ;;  %v1083_v11 = vsel %vm958_vm1, %v2584_v33, %v1732_v17  ;;  %vm975_vm9 = vcmp.gt.f32.partialorder %v2639_v57, 0.0  ;;  %v1141_v17 = vld [vmem:[%s2935_s5 + $0x108] sm:$0xff] }
 0x21c   :  { %v956_v48 = vpop.f32.mrf.mxu0  ;;  %1398 = vmatpush1.msra.mxu1 %v1091_v38  ;;  %vm974_vm10 = vcmp.gt.f32.partialorder %v2647_v61, 0.0 }
 0x21d   :  { %v1007_v20 = vmin.f32 %v2626_v46, 0.0  ;;  %1399 = vmatprep.subr.mxu1 %v1912_v14  ;;  %1870 = vpow2.f32 %v1054_v43  ;;  %vm982_vm2 = vcmp.gt.f32.partialorder %v2626_v46, 0.0 }
 0x21e   :  { %1400 = vmatpush1.msra.mxu1 %v1090_v53  ;;  %1872 = vpow2.f32 %v1052_v2  ;;  %v1115_v53 = vld [vmem:[%s2935_s5 + $0x38] sm:$0xff] }
 0x21f   :  { %v1056_v3 = vmul.f32 1.442695, %v1007_v20  ;;  %1401 = vmatprep.subr.mxu1 %v1912_v14  ;;  %v1112_v20 = vld [vmem:[%s2935_s5 + $0x20] sm:$0xff] }
 0x220   :  { %1402 = vmatpush1.msra.mxu1 %v1089_v59  ;;  %v1117_v59 = vld [vmem:[%s2935_s5 + $0x48] sm:$0xff] }
 0x221   :  { %1874 = vpow2.f32 %v1056_v3  ;;  %1403 = vmatprep.subr.mxu1 %v1912_v14  ;;  %v1120_v3 = vld [vmem:[%s2935_s5 + $0x60] sm:$0xff] }
 0x222   :  { %1404 = vmatpush1.msra.mxu1 %v1088_v55  ;;  %1876 = vpow2.f32 %v1050_v1  ;;  %v1121_v1 = vld [vmem:[%s2935_s5 + $0x68] sm:$0xff]  ;;  %v1122_v55 = vld [vmem:[%s2935_s5 + $0x70] sm:$0xff] }
 0x223   :  { %1405 = vmatprep.subr.mxu1 %v1912_v14  ;;  %1878 = vpow2.f32 %v1048_v27  ;;  %v1129_v27 = vld [vmem:[%s2935_s5 + $0xa8] sm:$0xff] }
 0x224   :  { %1406 = vmatpush1.msra.mxu1 %v1087_v4  ;;  %1880 = vpow2.f32 %v1046_v9  ;;  %v1130_v9 = vld [vmem:[%s2935_s5 + $0xb0] sm:$0xff]  ;;  %v1133_v4 = vld [vmem:[%s2935_s5 + $0xc8] sm:$0xff] }
 0x225   :  { %1407 = vmatprep.subr.mxu1 %v1912_v14  ;;  %1882 = vpow2.f32 %v1044_v22  ;;  %v1137_v22 = vld [vmem:[%s2935_s5 + $0xe8] sm:$0xff] }
 0x226   :  { %1408 = vmatpush1.msra.mxu1 %v1086_v15  ;;  %1884 = vpow2.f32 %v1042_v56  ;;  %v1136_v15 = vld [vmem:[%s2935_s5 + $0xe0] sm:$0xff]  ;;  %v1139_v56 = vld [vmem:[%s2935_s5 + $0xf8] sm:$0xff] }
 0x227   :  { %1409 = vmatprep.subr.mxu1 %v1912_v14  ;;  %1886 = vpow2.f32 %v1040_v26  ;;  %v1140_v26 = vld [vmem:[%s2935_s5 + $0x100] sm:$0xff] }
 0x228   :  { %1410 = vmatpush1.msra.mxu1 %v1085_v8  ;;  %v1138_v8 = vld [vmem:[%s2935_s5 + $0xf0] sm:$0xff] }
 0x229   :  { %1411 = vmatprep.subr.mxu1 %v1912_v14 }
 0x22a   :  { %1412 = vmatpush1.msra.mxu1 %v1084_v19  ;;  %v1871_v21 = vpop.eup %1870  ;;  %v1143_v19 = vld [vmem:[%s2935_s5 + $0x118] sm:$0xff] }
 0x22b   :  { %1413 = vmatprep.subr.mxu1 %v1912_v14  ;;  %v1873_v16 = vpop.eup %1872  ;;  %v1755_v51 = vadd.f32 -1.0, %v1871_v21  ;;  %v1145_v21 = vld [vmem:[%s2935_s5 + $0x128] sm:$0xff] }
 0x22c   :  { %1414 = vmatpush1.msra.mxu1 %v1083_v11  ;;  %v1754_v35 = vadd.f32 -1.0, %v1873_v16  ;;  %v1142_v11 = vld [vmem:[%s2935_s5 + $0x110] sm:$0xff]  ;;  %v1144_v16 = vld [vmem:[%s2935_s5 + $0x120] sm:$0xff] }
 0x22d   :  { %1429 = vmatprep.subr.mxu1 %v1912_v14  ;;  %v1106_v33 = vsel %vm981_vm3, %v2607_v24, %v1755_v51  ;;  %v1149_v51 = vld [vmem:[%s2935_s5 + $0x148] sm:$0xff] }
 0x22e   :  { %v1875_v25 = vpop.eup %1874  ;;  %v1105_v36 = vsel %vm980_vm4, %v2599_v12, %v1754_v35  ;;  %v1150_v35 = vld [vmem:[%s2935_s5 + $0x150] sm:$0xff] }
 0x22f   :  { %v1756_v30 = vadd.f32 -1.0, %v1875_v25  ;;  %v1877_v28 = vpop.eup %1876  ;;  %v1147_v25 = vld [vmem:[%s2935_s5 + $0x138] sm:$0xff] }
 0x230   :  { %v1879_v32 = vpop.eup %1878  ;;  %v1753_v49 = vadd.f32 -1.0, %v1877_v28  ;;  %v1148_v28 = vld [vmem:[%s2935_s5 + $0x140] sm:$0xff] }
 0x231   :  { %v1107_v54 = vsel %vm982_vm2, %v2626_v46, %v1756_v30  ;;  %v1881_v34 = vpop.eup %1880  ;;  %v1752_v38 = vadd.f32 -1.0, %v1879_v32  ;;  %v1146_v30 = vld [vmem:[%s2935_s5 + $0x130] sm:$0xff]  ;;  %v1153_v32 = vld [vmem:[%s2935_s5 + $0x168] sm:$0xff] }
 0x232   :  { %1430 = vmatpush2.msra.mxu1 %v1107_v54  ;;  %v1883_v39 = vpop.eup %1882  ;;  %v1104_v40 = vsel %vm979_vm5, %v2605_v23, %v1753_v49  ;;  %v1751_v31 = vadd.f32 -1.0, %v1881_v34  ;;  %v1151_v54 = vld [vmem:[%s2935_s5 + $0x158] sm:$0xff]  ;;  %v1154_v34 = vld [vmem:[%s2935_s5 + $0x170] sm:$0xff] }
 0x233   :  { %1431 = vmatprep.subr.mxu1 %v1912_v14  ;;  %v1885_v24 = vpop.eup %1884  ;;  %v1103_v43 = vsel %vm978_vm6, %v2615_v29, %v1752_v38  ;;  %v1750_v46 = vadd.f32 -1.0, %v1883_v39  ;;  %v1155_v49 = vld [vmem:[%s2935_s5 + $0x178] sm:$0xff]  ;;  %v1156_v38 = vld [vmem:[%s2935_s5 + $0x180] sm:$0xff] }
 0x234   :  { %1432 = vmatpush2.msra.mxu1 %v1106_v33  ;;  %v1887_v12 = vpop.eup %1886  ;;  %v1102_v2 = vsel %vm977_vm7, %v2622_v42, %v1751_v31  ;;  %v1749_v48 = vadd.f32 -1.0, %v1885_v24  ;;  %v1108_v42 = vld [vmem:[%s2935_s5] sm:$0xff] }
 0x235   :  { %1433 = vmatprep.subr.mxu1 %v1912_v14  ;;  %v1101_v23 = vsel %vm976_vm8, %v2632_v18, %v1750_v46  ;;  %v1748_v44 = vadd.f32 -1.0, %v1887_v12  ;;  %v1110_v18 = vld [vmem:[%s2935_s5 + $0x10] sm:$0xff]  ;;  %v1152_v33 = vld [vmem:[%s2935_s5 + $0x160] sm:$0xff] }
 0x236   :  { %1434 = vmatpush2.msra.mxu1 %v1105_v36  ;;  %v1100_v29 = vsel %vm975_vm9, %v2639_v57, %v1749_v48  ;;  %v1114_v57 = vld [vmem:[%s2935_s5 + $0x30] sm:$0xff]  ;;  %v1157_v36 = vld [vmem:[%s2935_s5 + $0x188] sm:$0xff] }
 0x237   :  { %1435 = vmatprep.subr.mxu1 %v1912_v14  ;;  %v1099_v50 = vsel %vm974_vm10, %v2647_v61, %v1748_v44  ;;  %v1127_v61 = vld [vmem:[%s2935_s5 + $0x98] sm:$0xff] }
 0x238   :  { %1436 = vmatpush2.msra.mxu1 %v1104_v40 }
 0x239   :  { %1437 = vmatprep.subr.mxu1 %v1912_v14 }
 0x23a   :  { %1438 = vmatpush2.msra.mxu1 %v1103_v43 }
 0x23b   :  { %1439 = vmatprep.subr.mxu1 %v1912_v14 }
 0x23c   :  { %1440 = vmatpush2.msra.mxu1 %v1102_v2 }
 0x23d   :  { %1441 = vmatprep.subr.mxu1 %v1912_v14 }
 0x23e   :  { %1442 = vmatpush2.msra.mxu1 %v1101_v23 }
 0x23f   :  { %1443 = vmatprep.subr.mxu1 %v1912_v14 }
 0x240   :  { %1444 = vmatpush2.msra.mxu1 %v1100_v29 }
 0x241   :  { %1445 = vmatprep.subr.mxu1 %v1912_v14 }
 0x242   :  { %1446 = vmatpush2.msra.mxu1 %v1099_v50 }
 0x243   :  { %1448 = vmatmul.mubr.f32.vlgmr.msra.gmra.mxu1 %v1108_v42 }
 0x244   :  { %1758 = vmatprep.mubr.msk.f32.mxu1 %vm692_vm0, %v1111_v52 }
 0x247   :  { %1453 = vmatmul.mubr.f32.gmra.mxu1 %v1110_v18 }
 0x248   :  { %1759 = vmatprep.mubr.msk.f32.mxu1 %vm692_vm0, %v1113_v47 }
 0x24b   :  { %1458 = vmatmul.mubr.f32.gmra.mxu1 %v1112_v20 }
 0x24c   :  { %1760 = vmatprep.mubr.msk.f32.mxu1 %vm692_vm0, %v1115_v53 }
 0x24f   :  { %1463 = vmatmul.mubr.f32.gmra.mxu1 %v1114_v57  ;;  %v1261_v57 = vpop.permute.xlu1 %1260 }
 0x250   :  { %1761 = vmatprep.mubr.msk.f32.mxu1 %vm692_vm0, %v1117_v59 }
 0x253   :  { %1468 = vmatmul.mubr.f32.gmra.mxu1 %v1116_v63 }
 0x254   :  { %1762 = vmatprep.mubr.msk.f32.mxu1 %vm692_vm0, %v1119_v37  ;;  %v1256_v37 = vpop.permute.xlu0 %1255 }
 0x257   :  { %1473 = vmatmul.mubr.f32.gmra.mxu1 %v1118_v10 }
 0x258   :  { %1763 = vmatprep.mubr.msk.f32.mxu1 %vm692_vm0, %v1121_v1  ;;  %v1251_v1 = vpop.permute.xlu1 %1250 }
 0x25b   :  { %1478 = vmatmul.mubr.f32.gmra.mxu1 %v1120_v3 }
 0x25c   :  { %1764 = vmatprep.mubr.msk.f32.mxu1 %vm692_vm0, %v1123_v5 }
 0x25f   :  { %1483 = vmatmul.mubr.f32.gmra.mxu1 %v1122_v55  ;;  %v1246_v55 = vpop.permute.xlu0 %1245 }
 0x260   :  { %1765 = vmatprep.mubr.msk.f32.mxu1 %vm692_vm0, %v1125_v0 }
 0x263   :  { %1488 = vmatmul.mubr.f32.gmra.mxu1 %v1124_v62  ;;  %v1241_v62 = vpop.permute.xlu1 %1240 }
 0x264   :  { %1766 = vmatprep.mubr.msk.f32.mxu1 %vm692_vm0, %v1127_v61 }
 0x267   :  { %1493 = vmatmul.mubr.f32.gmra.mxu1 %v1126_v6 }
 0x268   :  { %1767 = vmatprep.mubr.msk.f32.mxu1 %vm692_vm0, %v1129_v27  ;;  %v1236_v27 = vpop.permute.xlu0 %1235 }
 0x26b   :  { %1498 = vmatmul.mubr.f32.gmra.mxu1 %v1128_v7 }
 0x26c   :  { %1768 = vmatprep.mubr.msk.f32.mxu1 %vm692_vm0, %v1131_v60  ;;  %v1231_v60 = vpop.permute.xlu1 %1230 }
 0x26f   :  { %1503 = vmatmul.mubr.f32.gmra.mxu1 %v1130_v9 }
 0x270   :  { %1769 = vmatprep.mubr.msk.f32.mxu1 %vm692_vm0, %v1133_v4 }
 0x273   :  { %1508 = vmatmul.mubr.f32.gmra.mxu1 %v1132_v45  ;;  %v1226_v45 = vpop.permute.xlu0 %1225 }
 0x274   :  { %1770 = vmatprep.mubr.msk.f32.mxu1 %vm692_vm0, %v1135_v58 }
 0x277   :  { %1513 = vmatmul.mubr.f32.gmra.mxu1 %v1134_v13 }
 0x278   :  { %1771 = vmatprep.mubr.msk.f32.mxu1 %vm692_vm0, %v1137_v22 }
 0x27b   :  { %1518 = vmatmul.mubr.f32.gmra.mxu1 %v1136_v15  ;;  %v1221_v15 = vpop.permute.xlu1 %1220 }
 0x27c   :  { %1772 = vmatprep.mubr.msk.f32.mxu1 %vm692_vm0, %v1139_v56 }
 0x27f   :  { %1523 = vmatmul.mubr.f32.gmra.mxu1 %v1138_v8 }
 0x280   :  { %1773 = vmatprep.mubr.msk.f32.mxu1 %vm692_vm0, %v1141_v17 }
 0x283   :  { %1528 = vmatmul.mubr.f32.gmra.mxu1 %v1140_v26 }
 0x284   :  { %1774 = vmatprep.mubr.msk.f32.mxu1 %vm692_vm0, %v1143_v19 }
 0x287   :  { %1533 = vmatmul.mubr.f32.gmra.mxu1 %v1142_v11 }
 0x288   :  { %1775 = vmatprep.mubr.msk.f32.mxu1 %vm692_vm0, %v1145_v21  ;;  %v1216_v21 = vpop.permute.xlu0 %1215 }
 0x28b   :  { %1538 = vmatmul.mubr.f32.gmra.mxu1 %v1144_v16 }
 0x28c   :  { %1776 = vmatprep.mubr.msk.f32.mxu1 %vm692_vm0, %v1147_v25 }
 0x28f   :  { %1543 = vmatmul.mubr.f32.gmra.mxu1 %v1146_v30 }
 0x290   :  { %1777 = vmatprep.mubr.msk.f32.mxu1 %vm692_vm0, %v1149_v51  ;;  %v1211_v51 = vpop.permute.xlu1 %1210 }
 0x293   :  { %1548 = vmatmul.mubr.f32.gmra.mxu1 %v1148_v28 }
 0x294   :  { %1778 = vmatprep.mubr.msk.f32.mxu1 %vm692_vm0, %v1151_v54 }
 0x297   :  { %1553 = vmatmul.mubr.f32.gmra.mxu1 %v1150_v35 }
 0x298   :  { %1779 = vmatprep.mubr.msk.f32.mxu1 %vm692_vm0, %v1153_v32 }
 0x29b   :  { %1558 = vmatmul.mubr.f32.gmra.mxu1 %v1152_v33 }
 0x29c   :  { %1780 = vmatprep.mubr.msk.f32.mxu1 %vm692_vm0, %v1155_v49 }
 0x29f   :  { %1563 = vmatmul.mubr.f32.gmra.mxu1 %v1154_v34  ;;  %v1206_v34 = vpop.permute.xlu0 %1205 }
 0x2a0   :  { %1781 = vmatprep.mubr.msk.f32.mxu1 %vm692_vm0, %v1157_v36 }
 0x2a3   :  { %1568 = vmatmul.mubr.f32.gmra.mxu1 %v1156_v38 }
 0x303   :  { %v2866_v39 = vpop.f32.mrf.mxu1 }
 0x305   :  { %v1451_v40 = vpop.f32.mrf.mxu1 }
 0x307   :  { %v2868_v31 = vpop.f32.mrf.mxu1 }
 0x309   :  { %v1456_v24 = vpop.f32.mrf.mxu1 }
 0x30a   :  { %v1201_v24 = vpop.permute.xlu1 %1200 }
 0x30b   :  { %v2870_v43 = vpop.f32.mrf.mxu1 }
 0x30d   :  { %v1461_v46 = vpop.f32.mrf.mxu1 }
 0x30f   :  { %v2872_v12 = vpop.f32.mrf.mxu1 }
 0x311   :  { %v1466_v2 = vpop.f32.mrf.mxu1 }
 0x313   :  { %v2874_v48 = vpop.f32.mrf.mxu1 }
 0x315   :  { %v1471_v23 = vpop.f32.mrf.mxu1 }
 0x317   :  { %v2876_v44 = vpop.f32.mrf.mxu1 }
 0x319   :  { %v1476_v29 = vpop.f32.mrf.mxu1 }
 0x31b   :  { %v2878_v42 = vpop.f32.mrf.mxu1 }
 0x31d   :  { %v1481_v50 = vpop.f32.mrf.mxu1 }
 0x31e   :  { %v1480_v50 = vadd.f32 %v2878_v42, %v1216_v21  ;;  %v1465_v42 = vadd.f32 %v2872_v12, %v1201_v24 }
 0x31f   :  { %v1484_v52 = vpop.f32.mrf.mxu1 }
 0x320   :  { %v1485_v2 = vadd.f32 %v1484_v52, %v1221_v15 }
 0x321   :  { %v1486_v18 = vpop.f32.mrf.mxu1 }
 0x323   :  { %v1489_v47 = vpop.f32.mrf.mxu1 }
 0x324   :  { %v1490_v38 = vadd.f32 %v1489_v47, %v1226_v45  ;;  %v1475_v47 = vadd.f32 %v2876_v44, %v1211_v51 }
 0x325   :  { %v1491_v20 = vpop.f32.mrf.mxu1 }
 0x326   :  { %v1581_v18 = vmax.f32 %v1490_v38, 0.0  ;;  %v1196_v20 = vpop.permute.xlu0 %1195 }
 0x327   :  { %v1494_v53 = vpop.f32.mrf.mxu1  ;;  %v1460_v44 = vadd.f32 %v2870_v43, %v1196_v20 }
 0x328   :  { %v1495_v33 = vadd.f32 %v1494_v53, %v1231_v60 }
 0x329   :  { %v1496_v59 = vpop.f32.mrf.mxu1 }
 0x32a   :  { %v1582_v23 = vmax.f32 %v1495_v33, 0.0  ;;  %v1191_v59 = vpop.permute.xlu1 %1190 }
 0x32b   :  { %v1499_v63 = vpop.f32.mrf.mxu1 }
 0x32c   :  { %v1500_v54 = vadd.f32 %v1499_v63, %v1236_v27  ;;  %v1470_v63 = vadd.f32 %v2874_v48, %v1206_v34  ;;  %v1455_v48 = vadd.f32 %v2868_v31, %v1191_v59  ;;  %v1575_v27 = vmax.f32 %v1460_v44, 0.0 }
 0x32d   :  { %v1501_v10 = vpop.f32.mrf.mxu1 }
 0x32e   :  { %v1583_v40 = vmax.f32 %v1500_v54, 0.0  ;;  %v1574_v43 = vmax.f32 %v1455_v48, 0.0 }
 0x32f   :  { %v1504_v3 = vpop.f32.mrf.mxu1 }
 0x330   :  { %v1505_v25 = vadd.f32 %v1504_v3, %v1241_v62  ;;  %v1186_v3 = vpop.permute.xlu0 %1185 }
 0x331   :  { %v1506_v5 = vpop.f32.mrf.mxu1  ;;  %v1450_v12 = vadd.f32 %v2866_v39, %v1186_v3 }
 0x332   :  { %v1584_v49 = vmax.f32 %v1505_v25, 0.0 }
 0x333   :  { %v1509_v0 = vpop.f32.mrf.mxu1  ;;  %v1573_v31 = vmax.f32 %v1450_v12, 0.0 }
 0x334   :  { %v1510_v19 = vadd.f32 %v1509_v0, %v1246_v55  ;;  %v1577_v55 = vmax.f32 %v1470_v63, 0.0  ;;  %v1306_v0 = vpop.permute.xlu1 %1305 }
 0x335   :  { %v1511_v61 = vpop.f32.mrf.mxu1 }
 0x336   :  { %v1585_v35 = vmax.f32 %v1510_v19, 0.0  ;;  %v1576_v61 = vmax.f32 %v1465_v42, 0.0 }
 0x337   :  { %v1514_v6 = vpop.f32.mrf.mxu1 }
 0x338   :  { %v1515_v8 = vadd.f32 %v1514_v6, %v1251_v1  ;;  %v1578_v1 = vmax.f32 %v1475_v47, 0.0 }
 0x339   :  { %v1516_v7 = vpop.f32.mrf.mxu1 }
 0x33a   :  { %v1586_v30 = vmax.f32 %v1515_v8, 0.0  ;;  %v1301_v7 = vpop.permute.xlu0 %1300 }
 0x33b   :  { %v1519_v9 = vpop.f32.mrf.mxu1 }
 0x33c   :  { %v1520_v13 = vadd.f32 %v1519_v9, %v1256_v37  ;;  %v1579_v37 = vmax.f32 %v1480_v50, 0.0  ;;  %v1296_v9 = vpop.permute.xlu1 %1295 }
 0x33d   :  { %v1521_v4 = vpop.f32.mrf.mxu1 }
 0x33e   :  { %v1587_v11 = vmax.f32 %v1520_v13, 0.0 }
 0x33f   :  { %v1524_v58 = vpop.f32.mrf.mxu1 }
 0x340   :  { %v1525_v22 = vadd.f32 %v1524_v58, %v1261_v57  ;;  %v1580_v57 = vmax.f32 %v1485_v2, 0.0  ;;  %v1291_v58 = vpop.permute.xlu0 %1290  ;;  %v1286_v15 = vpop.permute.xlu1 %1285  ;;  %v1888_v2 = vld [vmem:[%s2937_s7] sm:$0x3]  ;;  %s1893_s7 = scalar_lea.vmem %s1699_s0, 32 }
 0x341   :  { %v1526_v56 = vpop.f32.mrf.mxu1  ;;  %p1895_p2 = scmp.lt.s32.totalorder %s1893_s7, %s1889_s30 }
 0x342   :  { %v1588_v17 = vmax.f32 %v1525_v22, 0.0 }
 0x343   :  { %v2880_v26 = vpop.f32.mrf.mxu1  ;;  %p1896_p3 = por %p1895_p2, %p1894_p1 }
 0x344   :  { %1622 = vmatpush1.msra.mxu0 %v1588_v17  ;;  %v1281_v21 = vpop.permute.xlu0 %1280 }
 0x345   :  { %v1531_v16 = vpop.f32.mrf.mxu1  ;;  %1623 = vmatprep.subr.mxu0 %v1912_v14  ;;  %p1897_p4 = pnand %p1896_p3, %p1890_p0 }
 0x346   :  { %1624 = vmatpush1.msra.mxu0 %v1587_v11 }
 0x347   :  { %v2883_v28 = vpop.f32.mrf.mxu1  ;;  %1625 = vmatprep.subr.mxu0 %v1912_v14 }
 0x348   :  { %1626 = vmatpush1.msra.mxu0 %v1586_v30  ;;  %v1276_v30 = vpop.permute.xlu1 %1275  ;;  %v1271_v33 = vpop.permute.xlu0 %1270 }
 0x349   :  { %v1536_v32 = vpop.f32.mrf.mxu1  ;;  %1627 = vmatprep.subr.mxu0 %v1912_v14 }
 0x34a   :  { %1628 = vmatpush1.msra.mxu0 %v1585_v35 }
 0x34b   :  { %v2887_v36 = vpop.f32.mrf.mxu1  ;;  %1629 = vmatprep.subr.mxu0 %v1912_v14 }
 0x34c   :  { %1630 = vmatpush1.msra.mxu0 %v1584_v49  ;;  %v1540_v35 = vadd.f32 %v2887_v36, %v1276_v30  ;;  %v1535_v49 = vadd.f32 %v2883_v28, %v1271_v33  ;;  %v1266_v38 = vpop.permute.xlu1 %1265 }
 0x34d   :  { %v1541_v46 = vpop.f32.mrf.mxu1  ;;  %1631 = vmatprep.subr.mxu0 %v1912_v14 }
 0x34e   :  { %1632 = vmatpush1.msra.mxu0 %v1583_v40  ;;  %v1530_v40 = vadd.f32 %v2880_v26, %v1266_v38  ;;  %v1591_v24 = vmax.f32 %v1540_v35, 0.0  ;;  %v1607_v46 = vsub.s32 0, %v2488_v41  ;;  %v1590_v36 = vmax.f32 %v1535_v49, 0.0  ;;  %v1603_v26 = vpop.permute.xlu0 %1602 }
 0x34f   :  { %v2891_v29 = vpop.f32.mrf.mxu1  ;;  %1633 = vmatprep.subr.mxu0 %v1912_v14 }
 0x350   :  { %1634 = vmatpush1.msra.mxu0 %v1582_v23  ;;  %v1545_v51 = vadd.f32 %v2891_v29, %v1281_v21  ;;  %v1613_v28 = vrot.slane %v1888_v2, %v1607_v46  ;;  %v1589_v23 = vmax.f32 %v1530_v40, 0.0  ;;  %v1608_v41 = vrot.slane %v1603_v26, %v1607_v46 }
 0x351   :  { %v1546_v53 = vpop.f32.mrf.mxu1  ;;  %1635 = vmatprep.subr.mxu0 %v1912_v14 }
 0x352   :  { %1636 = vmatpush1.msra.mxu0 %v1581_v18  ;;  %v1592_v34 = vmax.f32 %v1545_v51, 0.0 }
 0x353   :  { %v1549_v52 = vpop.f32.mrf.mxu1  ;;  %1637 = vmatprep.subr.mxu0 %v1912_v14 }
 0x354   :  { %1638 = vmatpush1.msra.mxu0 %v1580_v57  ;;  %v1550_v16 = vadd.f32 %v1549_v52, %v1286_v15 }
 0x355   :  { %v1551_v10 = vpop.f32.mrf.mxu1  ;;  %1639 = vmatprep.subr.mxu0 %v1912_v14 }
 0x356   :  { %1640 = vmatpush1.msra.mxu0 %v1579_v37  ;;  %v1593_v32 = vmax.f32 %v1550_v16, 0.0 }
 0x357   :  { %v1554_v5 = vpop.f32.mrf.mxu1  ;;  %1641 = vmatprep.subr.mxu0 %v1912_v14 }
 0x358   :  { %1642 = vmatpush1.msra.mxu0 %v1578_v1  ;;  %v1555_v19 = vadd.f32 %v1554_v5, %v1291_v58 }
 0x359   :  { %v1556_v62 = vpop.f32.mrf.mxu1  ;;  %1643 = vmatprep.subr.mxu0 %v1912_v14 }
 0x35a   :  { %1644 = vmatpush1.msra.mxu0 %v1577_v55  ;;  %v1594_v54 = vmax.f32 %v1555_v19, 0.0 }
 0x35b   :  { %v1559_v6 = vpop.f32.mrf.mxu1  ;;  %1645 = vmatprep.subr.mxu0 %v1912_v14 }
 0x35c   :  { %1646 = vmatpush1.msra.mxu0 %v1576_v61  ;;  %v1560_v8 = vadd.f32 %v1559_v6, %v1296_v9 }
 0x35d   :  { %v1561_v60 = vpop.f32.mrf.mxu1  ;;  %1647 = vmatprep.subr.mxu0 %v1912_v14 }
 0x35e   :  { %1648 = vmatpush1.msra.mxu0 %v1575_v27  ;;  %v1595_v25 = vmax.f32 %v1560_v8, 0.0 }
 0x35f   :  { %v1564_v4 = vpop.f32.mrf.mxu1  ;;  %1649 = vmatprep.subr.mxu0 %v1912_v14 }
 0x360   :  { %1650 = vmatpush1.msra.mxu0 %v1574_v43  ;;  %v1565_v13 = vadd.f32 %v1564_v4, %v1301_v7 }
 0x361   :  { %v1566_v45 = vpop.f32.mrf.mxu1  ;;  %1651 = vmatprep.subr.mxu0 %v1912_v14 }
 0x362   :  { %1652 = vmatpush1.msra.mxu0 %v1573_v31  ;;  %v1596_v11 = vmax.f32 %v1565_v13, 0.0 }
 0x363   :  { %v1569_v39 = vpop.f32.mrf.mxu1  ;;  %1667 = vmatprep.subr.mxu0 %v1912_v14 }
 0x364   :  { %v1570_v22 = vadd.f32 %v1569_v39, %v1306_v0 }
 0x365   :  { %v1571_v56 = vpop.f32.mrf.mxu1 }
 0x366   :  { %v1597_v17 = vmax.f32 %v1570_v22, 0.0 }
 0x368   :  { %1668 = vmatpush2.msra.mxu0 %v1597_v17 }
 0x369   :  { %1669 = vmatprep.subr.mxu0 %v1912_v14 }
 0x36a   :  { %1670 = vmatpush2.msra.mxu0 %v1596_v11 }
 0x36b   :  { %1671 = vmatprep.subr.mxu0 %v1912_v14 }
 0x36c   :  { %1672 = vmatpush2.msra.mxu0 %v1595_v25 }
 0x36d   :  { %1673 = vmatprep.subr.mxu0 %v1912_v14 }
 0x36e   :  { %1674 = vmatpush2.msra.mxu0 %v1594_v54 }
 0x36f   :  { %1675 = vmatprep.subr.mxu0 %v1912_v14 }
 0x370   :  { %1676 = vmatpush2.msra.mxu0 %v1593_v32 }
 0x371   :  { %1677 = vmatprep.subr.mxu0 %v1912_v14 }
 0x372   :  { %1678 = vmatpush2.msra.mxu0 %v1592_v34 }
 0x373   :  { %1679 = vmatprep.subr.mxu0 %v1912_v14 }
 0x374   :  { %1680 = vmatpush2.msra.mxu0 %v1591_v24 }
 0x375   :  { %1681 = vmatprep.subr.mxu0 %v1912_v14 }
 0x376   :  { %1682 = vmatpush2.msra.mxu0 %v1590_v36 }
 0x377   :  { %1683 = vmatprep.subr.mxu0 %v1912_v14 }
 0x378   :  { %1684 = vmatpush2.msra.mxu0 %v1589_v23 }
 0x379   :  { %1686 = vmatmul.mubr.f32.vlgmr.msra.gmra.mxu0 %v1613_v28 }
 0x439   :  { %v1687_v29 = vpop.f32.mrf.mxu0 }
 0x43a   :  { %v1688_v50 = vadd.f32 %v1687_v29, %v1608_v41 }
 0x43b   :  { %v1689_v18 = vpop.f32.mrf.mxu0 }
 0x43c   :  { %1691 = vst [vmem:[#allocation3] sm:$0x1] %v1688_v50 }
 0x43d   :  { %1900 = shalt.err (!%p1897_p4)
}
 0x43e   :  { %1701 = dma.vmem_to_hbm [thread:$0]  %s1699_s0, 16, %s2939_s9, [#allocation4]  }
 0x43f   :  { %1909 = dma.done.wait [#allocation4], 16  }
 0x440   :  { %1910 = vsyncadd [#allocation4], 4294967280 }
 0x441   :  { %1705 = vsyncpa [#allocation4], 1 }

</bundles_post_ra>
